<compile_context>
chip_gen: v6e
topology: v6e:2x2x1
jax: 0.10.0
libtpu: 0.0.40
codegen_flags: <defaults>
</compile_context>

<pallas_src>
import functools

import numpy as np
import jax
import jax.numpy as jnp
from jax.experimental import pallas as pl
from jax.experimental.pallas import tpu as pltpu

HIDDEN = 64          # "nn" in the PyTorch module
FC1_DIM = 100        # original fc1 width
FC1_PAD = 128        # lane-aligned fc1 width used inside the kernel
NUM_CLASSES = 2
NEG_BIG = -1e30      # finite fill for masked max (avoids -inf propagation)


def mlpnet_kernel(num_graphs,
                  x_ref, gid_ref, inv_cnt_ref,
                  w1_ref, b1_ref, w2_ref, b2_ref,
                  w3a_ref, w3b_ref, b3_ref, w4_ref, b4_ref,
                  out_ref, sum_acc, max_acc):
    step = pl.program_id(0)
    last = pl.num_programs(0) - 1

    @pl.when(step == 0)
    def _init():
        sum_acc[...] = jnp.zeros_like(sum_acc)
        max_acc[...] = jnp.full_like(max_acc, NEG_BIG)

    # ---- node MLP: relu(conv1) -> relu(conv2)  (bf16 MXU, f32 accumulate) ----
    x = x_ref[...].astype(jnp.bfloat16)                                   # [T, F]
    h = jnp.dot(x, w1_ref[...], preferred_element_type=jnp.float32) + b1_ref[...]
    h = jnp.maximum(h, 0.0)
    h = jnp.dot(h.astype(jnp.bfloat16), w2_ref[...],
                preferred_element_type=jnp.float32) + b2_ref[...]
    h = jnp.maximum(h, 0.0)                                               # [T, H] f32

    # ---- per-graph pooling accumulation (no [G,N] mask, no [G,N,H] temp) ----
    gid = gid_ref[...]                                                    # [T, 1] int32
    for g in range(num_graphs):                                           # small static G
        m = gid == g                                                      # [T, 1] bool
        seg_sum = jnp.sum(jnp.where(m, h, 0.0), axis=0, keepdims=True)    # [1, H]
        seg_max = jnp.max(jnp.where(m, h, NEG_BIG), axis=0, keepdims=True)
        sum_acc[g:g + 1, :] = sum_acc[g:g + 1, :] + seg_sum
        max_acc[g:g + 1, :] = jnp.maximum(max_acc[g:g + 1, :], seg_max)

    # ---- graph head on the last tile: relu(fc1) -> fc2 -> log_softmax ----
    @pl.when(step == last)
    def _finalize():
        mean_pool = sum_acc[...] * inv_cnt_ref[...]                       # [G, H]
        max_pool = max_acc[...]                                           # [G, H]
        # concat([mean, max]) @ w3  ==  mean @ w3[:H] + max @ w3[H:]
        z = (jnp.dot(mean_pool.astype(jnp.bfloat16), w3a_ref[...],
                     preferred_element_type=jnp.float32)
             + jnp.dot(max_pool.astype(jnp.bfloat16), w3b_ref[...],
                       preferred_element_type=jnp.float32)
             + b3_ref[...])
        z = jnp.maximum(z, 0.0)                                           # [G, 128]
        logits = jnp.dot(z.astype(jnp.bfloat16), w4_ref[...],
                         preferred_element_type=jnp.float32) + b4_ref[...]  # [G, 2]
        mmax = jnp.max(logits, axis=1, keepdims=True)
        lse = jnp.log(jnp.sum(jnp.exp(logits - mmax), axis=1, keepdims=True)) + mmax
        out_ref[...] = logits - lse                                       # log_softmax


def mlpnet_forward(x, batch, params, num_graphs, *, tile=64):
    """x: [N, F] float32 node features; batch: [N] int32 graph ids."""
    N, F = x.shape
    G = num_graphs
    assert N % tile == 0, "pad N to a multiple of the node tile"

    gid = batch.astype(jnp.int32).reshape(N, 1)                           # [N, 1]
    counts = jnp.sum(
        (batch[None, :] == jnp.arange(G, dtype=batch.dtype)[:, None]).astype(jnp.float32),
        axis=1, keepdims=True)
    inv_cnt = 1.0 / jnp.maximum(counts, 1.0)                              # [G, 1]

    w1, b1, w2, b2, w3, b3, w4, b4 = params
    pad = FC1_PAD - FC1_DIM
    w3p = jnp.pad(w3, ((0, 0), (0, pad)))                                 # [2H, 128]
    b3p = jnp.pad(b3, ((0, 0), (0, pad)))                                 # [1, 128]
    w4p = jnp.pad(w4, ((0, pad), (0, 0)))                                 # [128, 2]

    # bf16 MXU operands (halves weight DMA; f32 accumulation in the dots)
    w1b = w1.astype(jnp.bfloat16)
    w2b = w2.astype(jnp.bfloat16)
    w3a = w3p[:HIDDEN].astype(jnp.bfloat16)                               # [H, 128]
    w3b = w3p[HIDDEN:].astype(jnp.bfloat16)                               # [H, 128]
    w4b = w4p.astype(jnp.bfloat16)

    args = (x, gid, inv_cnt, w1b, b1, w2b, b2, w3a, w3b, b3p, w4b, b4)

    def const_spec(a):
        nd = a.ndim
        return pl.BlockSpec(a.shape, lambda i, _nd=nd: (0,) * _nd)

    in_specs = [
        pl.BlockSpec((tile, F), lambda i: (i, 0)),     # x: tiled over node rows
        pl.BlockSpec((tile, 1), lambda i: (i, 0)),     # graph ids: tiled
        const_spec(inv_cnt),                           # resident across grid
        const_spec(w1b), const_spec(b1),
        const_spec(w2b), const_spec(b2),
        const_spec(w3a), const_spec(w3b), const_spec(b3p),
        const_spec(w4b), const_spec(b4),
    ]
    out_spec = pl.BlockSpec((G, NUM_CLASSES), lambda i: (0, 0))

    kernel = functools.partial(mlpnet_kernel, G)

    return pl.pallas_call(
        kernel,
        out_shape=jax.ShapeDtypeStruct((G, NUM_CLASSES), jnp.float32),
        grid_spec=pltpu.PrefetchScalarGridSpec(
            num_scalar_prefetch=0,
            grid=(N // tile,),
            in_specs=in_specs,
            out_specs=out_spec,
            scratch_shapes=[pltpu.VMEM((G, HIDDEN), jnp.float32),   # sum accumulator
                            pltpu.VMEM((G, HIDDEN), jnp.float32)],  # max accumulator
        ),
        compiler_params=pltpu.CompilerParams(
            dimension_semantics=("arbitrary",)),   # reduction axis (shared accumulators)
    )(*args)


def init_params(key, num_features):
    """Deterministic PyTorch-Linear-style init (uniform +-1/sqrt(fan_in))."""
    def linear(k, fan_in, fan_out):
        kw, kb = jax.random.split(k)
        bound = 1.0 / jnp.sqrt(jnp.float32(fan_in))
        w = jax.random.uniform(kw, (fan_in, fan_out), jnp.float32, -bound, bound)
        b = jax.random.uniform(kb, (1, fan_out), jnp.float32, -bound, bound)
        return w, b

    k1, k2, k3, k4 = jax.random.split(key, 4)
    w1, b1 = linear(k1, num_features, HIDDEN)      # conv1
    w2, b2 = linear(k2, HIDDEN, HIDDEN)            # conv2
    w3, b3 = linear(k3, 2 * HIDDEN, FC1_DIM)       # fc1
    w4, b4 = linear(k4, FC1_DIM, NUM_CLASSES)      # fc2
    return (w1, b1, w2, b2, w3, b3, w4, b4)


def ref_forward(x, batch, params, G):
    """Pure-JAX reference with the same bf16-operand / f32-accumulate matmuls."""
    w1, b1, w2, b2, w3, b3, w4, b4 = params

    def bdot(a, w):
        return jnp.dot(a.astype(jnp.bfloat16), w.astype(jnp.bfloat16),
                       preferred_element_type=jnp.float32)

    h = jnp.maximum(bdot(x, w1) + b1, 0.0)
    h = jnp.maximum(bdot(h, w2) + b2, 0.0)
    mask = batch[None, :] == jnp.arange(G, dtype=batch.dtype)[:, None]    # [G, N]
    maskf = mask.astype(jnp.float32)
    mean_p = (maskf @ h) / jnp.maximum(maskf.sum(axis=1, keepdims=True), 1.0)
    max_p = jnp.max(jnp.where(mask[:, :, None], h[None, :, :], -jnp.inf), axis=1)
    g = jnp.maximum(bdot(jnp.concatenate([mean_p, max_p], axis=1), w3) + b3, 0.0)
    logits = bdot(g, w4) + b4
    return jax.nn.log_softmax(logits, axis=1)


if __name__ == "__main__":
    key = jax.random.PRNGKey(0)
    kx, kp = jax.random.split(key)

    N, F, G = 128, 16, 4                      # 128 nodes, 16 features, 4 graphs
    x = jax.random.normal(kx, (N, F), jnp.float32)
    # uneven graph sizes; graph 1 spans the node-tile boundary (exercises
    # cross-tile mean/max accumulation)
    sizes = [40, 40, 24, 24]
    batch = jnp.asarray(np.repeat(np.arange(G, dtype=np.int32), sizes))
    params = init_params(kp, F)

    out = jax.block_until_ready(mlpnet_forward(x, batch, params, G, tile=64))

    ref = ref_forward(x, batch, params, G)
    assert out.shape == (G, NUM_CLASSES)
    assert jnp.allclose(out, ref, atol=1e-2), (out, ref)
    print("KERNEL_OK")
</pallas_src>

<mosaic_0001>
module attributes {stable_mosaic.version = 11 : i64} {
  func.func @mlpnet_kernel(%arg0: i32, %arg1: memref<64x16xf32, #tpu.memory_space<vmem>>, %arg2: memref<64x1xi32, #tpu.memory_space<vmem>>, %arg3: memref<4x1xf32, #tpu.memory_space<vmem>>, %arg4: memref<16x64xbf16, #tpu.memory_space<vmem>>, %arg5: memref<1x64xf32, #tpu.memory_space<vmem>>, %arg6: memref<64x64xbf16, #tpu.memory_space<vmem>>, %arg7: memref<1x64xf32, #tpu.memory_space<vmem>>, %arg8: memref<64x128xbf16, #tpu.memory_space<vmem>>, %arg9: memref<64x128xbf16, #tpu.memory_space<vmem>>, %arg10: memref<1x128xf32, #tpu.memory_space<vmem>>, %arg11: memref<128x2xbf16, #tpu.memory_space<vmem>>, %arg12: memref<1x2xf32, #tpu.memory_space<vmem>>, %arg13: memref<4x2xf32, #tpu.memory_space<vmem>>, %arg14: memref<4x64xf32, #tpu.memory_space<vmem>>, %arg15: memref<4x64xf32, #tpu.memory_space<vmem>>) attributes {dimension_semantics = [#tpu.dimension_semantics<arbitrary>], iteration_bounds = array<i64: 2>, scalar_prefetch = 0 : i64, scratch_operands = 2 : i64, tpu.core_type = #tpu.core_type<tc>, window_params = [{transform_indices = @transform_0, window_bounds = array<i64: 64, 16>}, {transform_indices = @transform_1, window_bounds = array<i64: 64, 1>}, {pipeline_mode = #tpu.pipeline_mode<synchronous>, transform_indices = @transform_2, window_bounds = array<i64: 4, 1>}, {pipeline_mode = #tpu.pipeline_mode<synchronous>, transform_indices = @transform_3, window_bounds = array<i64: 16, 64>}, {pipeline_mode = #tpu.pipeline_mode<synchronous>, transform_indices = @transform_4, window_bounds = array<i64: 1, 64>}, {pipeline_mode = #tpu.pipeline_mode<synchronous>, transform_indices = @transform_5, window_bounds = array<i64: 64, 64>}, {pipeline_mode = #tpu.pipeline_mode<synchronous>, transform_indices = @transform_6, window_bounds = array<i64: 1, 64>}, {pipeline_mode = #tpu.pipeline_mode<synchronous>, transform_indices = @transform_7, window_bounds = array<i64: 64, 128>}, {pipeline_mode = #tpu.pipeline_mode<synchronous>, transform_indices = @transform_8, window_bounds = array<i64: 64, 128>}, {pipeline_mode = #tpu.pipeline_mode<synchronous>, transform_indices = @transform_9, window_bounds = array<i64: 1, 128>}, {pipeline_mode = #tpu.pipeline_mode<synchronous>, transform_indices = @transform_10, window_bounds = array<i64: 128, 2>}, {pipeline_mode = #tpu.pipeline_mode<synchronous>, transform_indices = @transform_11, window_bounds = array<i64: 1, 2>}, {pipeline_mode = #tpu.pipeline_mode<synchronous>, transform_indices = @transform_12, window_bounds = array<i64: 4, 2>}]} {
    %c0_i32 = arith.constant 0 : i32
    %0 = arith.cmpi eq, %arg0, %c0_i32 : i32
    %1 = arith.extui %0 : i1 to i32
    %c0_i32_0 = arith.constant 0 : i32
    %2 = arith.cmpi ne, %1, %c0_i32_0 : i32
    scf.if %2 {
      %cst_63 = arith.constant 0.000000e+00 : f32
      %104 = vector.broadcast %cst_63 : f32 to vector<4x64xf32>
      %c0_64 = arith.constant 0 : index
      %c0_65 = arith.constant 0 : index
      %105 = vector.load %arg14[%c0_64, %c0_65] : memref<4x64xf32, #tpu.memory_space<vmem>>, vector<4x64xf32>
      tpu.vector_store %arg14[%c0_64, %c0_65], %104 {strides = array<i32>} : memref<4x64xf32, #tpu.memory_space<vmem>>, vector<4x64xf32>,
      %cst_66 = arith.constant -1.000000e+30 : f32
      %106 = vector.broadcast %cst_66 : f32 to vector<4x64xf32>
      %c0_67 = arith.constant 0 : index
      %c0_68 = arith.constant 0 : index
      %107 = vector.load %arg15[%c0_67, %c0_68] : memref<4x64xf32, #tpu.memory_space<vmem>>, vector<4x64xf32>
      tpu.vector_store %arg15[%c0_67, %c0_68], %106 {strides = array<i32>} : memref<4x64xf32, #tpu.memory_space<vmem>>, vector<4x64xf32>,
    } else {
    }
    %c0 = arith.constant 0 : index
    %c0_1 = arith.constant 0 : index
    %3 = vector.load %arg1[%c0, %c0_1] : memref<64x16xf32, #tpu.memory_space<vmem>>, vector<64x16xf32>
    %4 = arith.truncf %3 : vector<64x16xf32> to vector<64x16xbf16>
    %c0_2 = arith.constant 0 : index
    %c0_3 = arith.constant 0 : index
    %5 = vector.load %arg4[%c0_2, %c0_3] : memref<16x64xbf16, #tpu.memory_space<vmem>>, vector<16x64xbf16>
    %cst = arith.constant dense<0.000000e+00> : vector<64x64xf32>
    %6 = tpu.matmul %4, %5, %cst {dimension_numbers = #tpu.dot_dimension_numbers<[1], [0], [0], [1], [0, 0, 1, 1], [], []>} : vector<64x16xbf16>, vector<16x64xbf16>, vector<64x64xf32> -> vector<64x64xf32>
    %c0_4 = arith.constant 0 : index
    %c0_5 = arith.constant 0 : index
    %7 = vector.load %arg5[%c0_4, %c0_5] : memref<1x64xf32, #tpu.memory_space<vmem>>, vector<1x64xf32>
    %8 = vector.broadcast %7 : vector<1x64xf32> to vector<64x64xf32>
    %9 = arith.addf %6, %8 : vector<64x64xf32>
    %cst_6 = arith.constant 0.000000e+00 : f32
    %10 = vector.broadcast %cst_6 : f32 to vector<64x64xf32>
    %11 = arith.maximumf %9, %10 : vector<64x64xf32>
    %12 = arith.truncf %11 : vector<64x64xf32> to vector<64x64xbf16>
    %c0_7 = arith.constant 0 : index
    %c0_8 = arith.constant 0 : index
    %13 = vector.load %arg6[%c0_7, %c0_8] : memref<64x64xbf16, #tpu.memory_space<vmem>>, vector<64x64xbf16>
    %cst_9 = arith.constant dense<0.000000e+00> : vector<64x64xf32>
    %14 = tpu.matmul %12, %13, %cst_9 {dimension_numbers = #tpu.dot_dimension_numbers<[1], [0], [0], [1], [0, 0, 1, 1], [], []>} : vector<64x64xbf16>, vector<64x64xbf16>, vector<64x64xf32> -> vector<64x64xf32>
    %c0_10 = arith.constant 0 : index
    %c0_11 = arith.constant 0 : index
    %15 = vector.load %arg7[%c0_10, %c0_11] : memref<1x64xf32, #tpu.memory_space<vmem>>, vector<1x64xf32>
    %16 = vector.broadcast %15 : vector<1x64xf32> to vector<64x64xf32>
    %17 = arith.addf %14, %16 : vector<64x64xf32>
    %cst_12 = arith.constant 0.000000e+00 : f32
    %18 = vector.broadcast %cst_12 : f32 to vector<64x64xf32>
    %19 = arith.maximumf %17, %18 : vector<64x64xf32>
    %c0_13 = arith.constant 0 : index
    %c0_14 = arith.constant 0 : index
    %20 = vector.load %arg2[%c0_13, %c0_14] : memref<64x1xi32, #tpu.memory_space<vmem>>, vector<64x1xi32>
    %c0_i32_15 = arith.constant 0 : i32
    %21 = vector.broadcast %c0_i32_15 : i32 to vector<64x1xi32>
    %22 = arith.cmpi eq, %20, %21 : vector<64x1xi32>
    %cst_16 = arith.constant 0.000000e+00 : f32
    %23 = vector.shape_cast %22 : vector<64x1xi1> to vector<64x1xi1>
    %24 = vector.broadcast %23 : vector<64x1xi1> to vector<64x64xi1>
    %25 = vector.broadcast %cst_16 : f32 to vector<64x64xf32>
    %26 = arith.select %24, %19, %25 : vector<64x64xi1>, vector<64x64xf32>
    %cst_17 = arith.constant dense<0.000000e+00> : vector<64xf32>
    %27 = vector.multi_reduction <add>, %26, %cst_17 [0] : vector<64x64xf32> to vector<64xf32>
    %28 = vector.shape_cast %27 : vector<64xf32> to vector<1x64xf32>
    %cst_18 = arith.constant -1.000000e+30 : f32
    %29 = vector.shape_cast %22 : vector<64x1xi1> to vector<64x1xi1>
    %30 = vector.broadcast %29 : vector<64x1xi1> to vector<64x64xi1>
    %31 = vector.broadcast %cst_18 : f32 to vector<64x64xf32>
    %32 = arith.select %30, %19, %31 : vector<64x64xi1>, vector<64x64xf32>
    %cst_19 = arith.constant dense<0xFF800000> : vector<64xf32>
    %33 = vector.multi_reduction <maximumf>, %32, %cst_19 [0] : vector<64x64xf32> to vector<64xf32>
    %34 = vector.shape_cast %33 : vector<64xf32> to vector<1x64xf32>
    %c0_20 = arith.constant 0 : index
    %c0_21 = arith.constant 0 : index
    %35 = vector.load %arg14[%c0_20, %c0_21] : memref<4x64xf32, #tpu.memory_space<vmem>>, vector<1x64xf32>
    %36 = arith.addf %35, %28 : vector<1x64xf32>
    %c0_22 = arith.constant 0 : index
    %c0_23 = arith.constant 0 : index
    %37 = vector.load %arg14[%c0_22, %c0_23] : memref<4x64xf32, #tpu.memory_space<vmem>>, vector<1x64xf32>
    tpu.vector_store %arg14[%c0_22, %c0_23], %36 {strides = array<i32>} : memref<4x64xf32, #tpu.memory_space<vmem>>, vector<1x64xf32>,
    %c0_24 = arith.constant 0 : index
    %c0_25 = arith.constant 0 : index
    %38 = vector.load %arg15[%c0_24, %c0_25] : memref<4x64xf32, #tpu.memory_space<vmem>>, vector<1x64xf32>
    %39 = arith.maximumf %38, %34 : vector<1x64xf32>
    %c0_26 = arith.constant 0 : index
    %c0_27 = arith.constant 0 : index
    %40 = vector.load %arg15[%c0_26, %c0_27] : memref<4x64xf32, #tpu.memory_space<vmem>>, vector<1x64xf32>
    tpu.vector_store %arg15[%c0_26, %c0_27], %39 {strides = array<i32>} : memref<4x64xf32, #tpu.memory_space<vmem>>, vector<1x64xf32>,
    %c1_i32 = arith.constant 1 : i32
    %41 = vector.broadcast %c1_i32 : i32 to vector<64x1xi32>
    %42 = arith.cmpi eq, %20, %41 : vector<64x1xi32>
    %cst_28 = arith.constant 0.000000e+00 : f32
    %43 = vector.shape_cast %42 : vector<64x1xi1> to vector<64x1xi1>
    %44 = vector.broadcast %43 : vector<64x1xi1> to vector<64x64xi1>
    %45 = vector.broadcast %cst_28 : f32 to vector<64x64xf32>
    %46 = arith.select %44, %19, %45 : vector<64x64xi1>, vector<64x64xf32>
    %cst_29 = arith.constant dense<0.000000e+00> : vector<64xf32>
    %47 = vector.multi_reduction <add>, %46, %cst_29 [0] : vector<64x64xf32> to vector<64xf32>
    %48 = vector.shape_cast %47 : vector<64xf32> to vector<1x64xf32>
    %cst_30 = arith.constant -1.000000e+30 : f32
    %49 = vector.shape_cast %42 : vector<64x1xi1> to vector<64x1xi1>
    %50 = vector.broadcast %49 : vector<64x1xi1> to vector<64x64xi1>
    %51 = vector.broadcast %cst_30 : f32 to vector<64x64xf32>
    %52 = arith.select %50, %19, %51 : vector<64x64xi1>, vector<64x64xf32>
    %cst_31 = arith.constant dense<0xFF800000> : vector<64xf32>
    %53 = vector.multi_reduction <maximumf>, %52, %cst_31 [0] : vector<64x64xf32> to vector<64xf32>
    %54 = vector.shape_cast %53 : vector<64xf32> to vector<1x64xf32>
    %c1 = arith.constant 1 : index
    %c0_32 = arith.constant 0 : index
    %55 = vector.load %arg14[%c1, %c0_32] : memref<4x64xf32, #tpu.memory_space<vmem>>, vector<1x64xf32>
    %56 = arith.addf %55, %48 : vector<1x64xf32>
    %c1_33 = arith.constant 1 : index
    %c0_34 = arith.constant 0 : index
    %57 = vector.load %arg14[%c1_33, %c0_34] : memref<4x64xf32, #tpu.memory_space<vmem>>, vector<1x64xf32>
    tpu.vector_store %arg14[%c1_33, %c0_34], %56 {strides = array<i32>} : memref<4x64xf32, #tpu.memory_space<vmem>>, vector<1x64xf32>,
    %c1_35 = arith.constant 1 : index
    %c0_36 = arith.constant 0 : index
    %58 = vector.load %arg15[%c1_35, %c0_36] : memref<4x64xf32, #tpu.memory_space<vmem>>, vector<1x64xf32>
    %59 = arith.maximumf %58, %54 : vector<1x64xf32>
    %c1_37 = arith.constant 1 : index
    %c0_38 = arith.constant 0 : index
    %60 = vector.load %arg15[%c1_37, %c0_38] : memref<4x64xf32, #tpu.memory_space<vmem>>, vector<1x64xf32>
    tpu.vector_store %arg15[%c1_37, %c0_38], %59 {strides = array<i32>} : memref<4x64xf32, #tpu.memory_space<vmem>>, vector<1x64xf32>,
    %c2_i32 = arith.constant 2 : i32
    %61 = vector.broadcast %c2_i32 : i32 to vector<64x1xi32>
    %62 = arith.cmpi eq, %20, %61 : vector<64x1xi32>
    %cst_39 = arith.constant 0.000000e+00 : f32
    %63 = vector.shape_cast %62 : vector<64x1xi1> to vector<64x1xi1>
    %64 = vector.broadcast %63 : vector<64x1xi1> to vector<64x64xi1>
    %65 = vector.broadcast %cst_39 : f32 to vector<64x64xf32>
    %66 = arith.select %64, %19, %65 : vector<64x64xi1>, vector<64x64xf32>
    %cst_40 = arith.constant dense<0.000000e+00> : vector<64xf32>
    %67 = vector.multi_reduction <add>, %66, %cst_40 [0] : vector<64x64xf32> to vector<64xf32>
    %68 = vector.shape_cast %67 : vector<64xf32> to vector<1x64xf32>
    %cst_41 = arith.constant -1.000000e+30 : f32
    %69 = vector.shape_cast %62 : vector<64x1xi1> to vector<64x1xi1>
    %70 = vector.broadcast %69 : vector<64x1xi1> to vector<64x64xi1>
    %71 = vector.broadcast %cst_41 : f32 to vector<64x64xf32>
    %72 = arith.select %70, %19, %71 : vector<64x64xi1>, vector<64x64xf32>
    %cst_42 = arith.constant dense<0xFF800000> : vector<64xf32>
    %73 = vector.multi_reduction <maximumf>, %72, %cst_42 [0] : vector<64x64xf32> to vector<64xf32>
    %74 = vector.shape_cast %73 : vector<64xf32> to vector<1x64xf32>
    %c2 = arith.constant 2 : index
    %c0_43 = arith.constant 0 : index
    %75 = vector.load %arg14[%c2, %c0_43] : memref<4x64xf32, #tpu.memory_space<vmem>>, vector<1x64xf32>
    %76 = arith.addf %75, %68 : vector<1x64xf32>
    %c2_44 = arith.constant 2 : index
    %c0_45 = arith.constant 0 : index
    %77 = vector.load %arg14[%c2_44, %c0_45] : memref<4x64xf32, #tpu.memory_space<vmem>>, vector<1x64xf32>
    tpu.vector_store %arg14[%c2_44, %c0_45], %76 {strides = array<i32>} : memref<4x64xf32, #tpu.memory_space<vmem>>, vector<1x64xf32>,
    %c2_46 = arith.constant 2 : index
    %c0_47 = arith.constant 0 : index
    %78 = vector.load %arg15[%c2_46, %c0_47] : memref<4x64xf32, #tpu.memory_space<vmem>>, vector<1x64xf32>
    %79 = arith.maximumf %78, %74 : vector<1x64xf32>
    %c2_48 = arith.constant 2 : index
    %c0_49 = arith.constant 0 : index
    %80 = vector.load %arg15[%c2_48, %c0_49] : memref<4x64xf32, #tpu.memory_space<vmem>>, vector<1x64xf32>
    tpu.vector_store %arg15[%c2_48, %c0_49], %79 {strides = array<i32>} : memref<4x64xf32, #tpu.memory_space<vmem>>, vector<1x64xf32>,
    %c3_i32 = arith.constant 3 : i32
    %81 = vector.broadcast %c3_i32 : i32 to vector<64x1xi32>
    %82 = arith.cmpi eq, %20, %81 : vector<64x1xi32>
    %cst_50 = arith.constant 0.000000e+00 : f32
    %83 = vector.shape_cast %82 : vector<64x1xi1> to vector<64x1xi1>
    %84 = vector.broadcast %83 : vector<64x1xi1> to vector<64x64xi1>
    %85 = vector.broadcast %cst_50 : f32 to vector<64x64xf32>
    %86 = arith.select %84, %19, %85 : vector<64x64xi1>, vector<64x64xf32>
    %cst_51 = arith.constant dense<0.000000e+00> : vector<64xf32>
    %87 = vector.multi_reduction <add>, %86, %cst_51 [0] : vector<64x64xf32> to vector<64xf32>
    %88 = vector.shape_cast %87 : vector<64xf32> to vector<1x64xf32>
    %cst_52 = arith.constant -1.000000e+30 : f32
    %89 = vector.shape_cast %82 : vector<64x1xi1> to vector<64x1xi1>
    %90 = vector.broadcast %89 : vector<64x1xi1> to vector<64x64xi1>
    %91 = vector.broadcast %cst_52 : f32 to vector<64x64xf32>
    %92 = arith.select %90, %19, %91 : vector<64x64xi1>, vector<64x64xf32>
    %cst_53 = arith.constant dense<0xFF800000> : vector<64xf32>
    %93 = vector.multi_reduction <maximumf>, %92, %cst_53 [0] : vector<64x64xf32> to vector<64xf32>
    %94 = vector.shape_cast %93 : vector<64xf32> to vector<1x64xf32>
    %c3 = arith.constant 3 : index
    %c0_54 = arith.constant 0 : index
    %95 = vector.load %arg14[%c3, %c0_54] : memref<4x64xf32, #tpu.memory_space<vmem>>, vector<1x64xf32>
    %96 = arith.addf %95, %88 : vector<1x64xf32>
    %c3_55 = arith.constant 3 : index
    %c0_56 = arith.constant 0 : index
    %97 = vector.load %arg14[%c3_55, %c0_56] : memref<4x64xf32, #tpu.memory_space<vmem>>, vector<1x64xf32>
    tpu.vector_store %arg14[%c3_55, %c0_56], %96 {strides = array<i32>} : memref<4x64xf32, #tpu.memory_space<vmem>>, vector<1x64xf32>,
    %c3_57 = arith.constant 3 : index
    %c0_58 = arith.constant 0 : index
    %98 = vector.load %arg15[%c3_57, %c0_58] : memref<4x64xf32, #tpu.memory_space<vmem>>, vector<1x64xf32>
    %99 = arith.maximumf %98, %94 : vector<1x64xf32>
    %c3_59 = arith.constant 3 : index
    %c0_60 = arith.constant 0 : index
    %100 = vector.load %arg15[%c3_59, %c0_60] : memref<4x64xf32, #tpu.memory_space<vmem>>, vector<1x64xf32>
    tpu.vector_store %arg15[%c3_59, %c0_60], %99 {strides = array<i32>} : memref<4x64xf32, #tpu.memory_space<vmem>>, vector<1x64xf32>,
    %c1_i32_61 = arith.constant 1 : i32
    %101 = arith.cmpi eq, %arg0, %c1_i32_61 : i32
    %102 = arith.extui %101 : i1 to i32
    %c0_i32_62 = arith.constant 0 : i32
    %103 = arith.cmpi ne, %102, %c0_i32_62 : i32
    scf.if %103 {
      %c0_63 = arith.constant 0 : index
      %c0_64 = arith.constant 0 : index
      %104 = vector.load %arg14[%c0_63, %c0_64] : memref<4x64xf32, #tpu.memory_space<vmem>>, vector<4x64xf32>
      %c0_65 = arith.constant 0 : index
      %c0_66 = arith.constant 0 : index
      %105 = vector.load %arg3[%c0_65, %c0_66] : memref<4x1xf32, #tpu.memory_space<vmem>>, vector<4x1xf32>
      %106 = vector.broadcast %105 : vector<4x1xf32> to vector<4x64xf32>
      %107 = arith.mulf %104, %106 : vector<4x64xf32>
      %c0_67 = arith.constant 0 : index
      %c0_68 = arith.constant 0 : index
      %108 = vector.load %arg15[%c0_67, %c0_68] : memref<4x64xf32, #tpu.memory_space<vmem>>, vector<4x64xf32>
      %109 = arith.truncf %107 : vector<4x64xf32> to vector<4x64xbf16>
      %c0_69 = arith.constant 0 : index
      %c0_70 = arith.constant 0 : index
      %110 = vector.load %arg8[%c0_69, %c0_70] : memref<64x128xbf16, #tpu.memory_space<vmem>>, vector<64x128xbf16>
      %cst_71 = arith.constant dense<0.000000e+00> : vector<4x128xf32>
      %111 = tpu.matmul %109, %110, %cst_71 {dimension_numbers = #tpu.dot_dimension_numbers<[1], [0], [0], [1], [0, 0, 1, 1], [], []>} : vector<4x64xbf16>, vector<64x128xbf16>, vector<4x128xf32> -> vector<4x128xf32>
      %112 = arith.truncf %108 : vector<4x64xf32> to vector<4x64xbf16>
      %c0_72 = arith.constant 0 : index
      %c0_73 = arith.constant 0 : index
      %113 = vector.load %arg9[%c0_72, %c0_73] : memref<64x128xbf16, #tpu.memory_space<vmem>>, vector<64x128xbf16>
      %cst_74 = arith.constant dense<0.000000e+00> : vector<4x128xf32>
      %114 = tpu.matmul %112, %113, %cst_74 {dimension_numbers = #tpu.dot_dimension_numbers<[1], [0], [0], [1], [0, 0, 1, 1], [], []>} : vector<4x64xbf16>, vector<64x128xbf16>, vector<4x128xf32> -> vector<4x128xf32>
      %115 = arith.addf %111, %114 : vector<4x128xf32>
      %c0_75 = arith.constant 0 : index
      %c0_76 = arith.constant 0 : index
      %116 = vector.load %arg10[%c0_75, %c0_76] : memref<1x128xf32, #tpu.memory_space<vmem>>, vector<1x128xf32>
      %117 = vector.broadcast %116 : vector<1x128xf32> to vector<4x128xf32>
      %118 = arith.addf %115, %117 : vector<4x128xf32>
      %cst_77 = arith.constant 0.000000e+00 : f32
      %119 = vector.broadcast %cst_77 : f32 to vector<4x128xf32>
      %120 = arith.maximumf %118, %119 : vector<4x128xf32>
      %121 = arith.truncf %120 : vector<4x128xf32> to vector<4x128xbf16>
      %c0_78 = arith.constant 0 : index
      %c0_79 = arith.constant 0 : index
      %122 = vector.load %arg11[%c0_78, %c0_79] : memref<128x2xbf16, #tpu.memory_space<vmem>>, vector<128x2xbf16>
      %cst_80 = arith.constant dense<0.000000e+00> : vector<4x2xf32>
      %123 = tpu.matmul %121, %122, %cst_80 {dimension_numbers = #tpu.dot_dimension_numbers<[1], [0], [0], [1], [0, 0, 1, 1], [], []>} : vector<4x128xbf16>, vector<128x2xbf16>, vector<4x2xf32> -> vector<4x2xf32>
      %c0_81 = arith.constant 0 : index
      %c0_82 = arith.constant 0 : index
      %124 = vector.load %arg12[%c0_81, %c0_82] : memref<1x2xf32, #tpu.memory_space<vmem>>, vector<1x2xf32>
      %125 = vector.broadcast %124 : vector<1x2xf32> to vector<4x2xf32>
      %126 = arith.addf %123, %125 : vector<4x2xf32>
      %cst_83 = arith.constant dense<0xFF800000> : vector<4xf32>
      %127 = vector.multi_reduction <maximumf>, %126, %cst_83 [1] : vector<4x2xf32> to vector<4xf32>
      %128 = vector.shape_cast %127 : vector<4xf32> to vector<4x1xf32>
      %129 = vector.broadcast %128 : vector<4x1xf32> to vector<4x2xf32>
      %130 = arith.subf %126, %129 : vector<4x2xf32>
      %131 = math.exp %130 : vector<4x2xf32>
      %cst_84 = arith.constant dense<0.000000e+00> : vector<4xf32>
      %132 = vector.multi_reduction <add>, %131, %cst_84 [1] : vector<4x2xf32> to vector<4xf32>
      %133 = vector.shape_cast %132 : vector<4xf32> to vector<4x1xf32>
      %134 = math.log %133 : vector<4x1xf32>
      %135 = arith.addf %134, %128 : vector<4x1xf32>
      %136 = vector.broadcast %135 : vector<4x1xf32> to vector<4x2xf32>
      %137 = arith.subf %126, %136 : vector<4x2xf32>
      %c0_85 = arith.constant 0 : index
      %c0_86 = arith.constant 0 : index
      %138 = vector.load %arg13[%c0_85, %c0_86] : memref<4x2xf32, #tpu.memory_space<vmem>>, vector<4x2xf32>
      tpu.vector_store %arg13[%c0_85, %c0_86], %137 {strides = array<i32>} : memref<4x2xf32, #tpu.memory_space<vmem>>, vector<4x2xf32>,
    } else {
    }
    return
  }
  func.func @transform_0(%arg0: i32) -> (i32, i32) {
    %c0_i32 = arith.constant 0 : i32
    %c0_i32_0 = arith.constant 0 : i32
    return %arg0, %c0_i32 : i32, i32
  }
  func.func @transform_1(%arg0: i32) -> (i32, i32) {
    %c0_i32 = arith.constant 0 : i32
    %c0_i32_0 = arith.constant 0 : i32
    return %arg0, %c0_i32 : i32, i32
  }
  func.func @transform_2(%arg0: i32) -> (i32, i32) {
    %c0_i32 = arith.constant 0 : i32
    %c0_i32_0 = arith.constant 0 : i32
    %c0_i32_1 = arith.constant 0 : i32
    return %c0_i32, %c0_i32_0 : i32, i32
  }
  func.func @transform_3(%arg0: i32) -> (i32, i32) {
    %c0_i32 = arith.constant 0 : i32
    %c0_i32_0 = arith.constant 0 : i32
    %c0_i32_1 = arith.constant 0 : i32
    return %c0_i32, %c0_i32_0 : i32, i32
  }
  func.func @transform_4(%arg0: i32) -> (i32, i32) {
    %c0_i32 = arith.constant 0 : i32
    %c0_i32_0 = arith.constant 0 : i32
    %c0_i32_1 = arith.constant 0 : i32
    return %c0_i32, %c0_i32_0 : i32, i32
  }
  func.func @transform_5(%arg0: i32) -> (i32, i32) {
    %c0_i32 = arith.constant 0 : i32
    %c0_i32_0 = arith.constant 0 : i32
    %c0_i32_1 = arith.constant 0 : i32
    return %c0_i32, %c0_i32_0 : i32, i32
  }
  func.func @transform_6(%arg0: i32) -> (i32, i32) {
    %c0_i32 = arith.constant 0 : i32
    %c0_i32_0 = arith.constant 0 : i32
    %c0_i32_1 = arith.constant 0 : i32
    return %c0_i32, %c0_i32_0 : i32, i32
  }
  func.func @transform_7(%arg0: i32) -> (i32, i32) {
    %c0_i32 = arith.constant 0 : i32
    %c0_i32_0 = arith.constant 0 : i32
    %c0_i32_1 = arith.constant 0 : i32
    return %c0_i32, %c0_i32_0 : i32, i32
  }
  func.func @transform_8(%arg0: i32) -> (i32, i32) {
    %c0_i32 = arith.constant 0 : i32
    %c0_i32_0 = arith.constant 0 : i32
    %c0_i32_1 = arith.constant 0 : i32
    return %c0_i32, %c0_i32_0 : i32, i32
  }
  func.func @transform_9(%arg0: i32) -> (i32, i32) {
    %c0_i32 = arith.constant 0 : i32
    %c0_i32_0 = arith.constant 0 : i32
    %c0_i32_1 = arith.constant 0 : i32
    return %c0_i32, %c0_i32_0 : i32, i32
  }
  func.func @transform_10(%arg0: i32) -> (i32, i32) {
    %c0_i32 = arith.constant 0 : i32
    %c0_i32_0 = arith.constant 0 : i32
    %c0_i32_1 = arith.constant 0 : i32
    return %c0_i32, %c0_i32_0 : i32, i32
  }
  func.func @transform_11(%arg0: i32) -> (i32, i32) {
    %c0_i32 = arith.constant 0 : i32
    %c0_i32_0 = arith.constant 0 : i32
    %c0_i32_1 = arith.constant 0 : i32
    return %c0_i32, %c0_i32_0 : i32, i32
  }
  func.func @transform_12(%arg0: i32) -> (i32, i32) {
    %c0_i32 = arith.constant 0 : i32
    %c0_i32_0 = arith.constant 0 : i32
    %c0_i32_1 = arith.constant 0 : i32
    return %c0_i32, %c0_i32_0 : i32, i32
  }
}

</mosaic_0001>

<bundles_post_ra>
// kernel: tpu_custom_call.1
= control target key start
LH: loop header
LB: loop body
LE: loop exit
PB: predicated region body
PF: predicated region fallthrough
CT: control target
= control target key end

     0   :  { %s1749_s21 = smov 0   ;;  %s2346_s0 = inlined_call_operand.vmem [shape: f32[128,16], index: 0, kind: input, shape index: {}]   ;;  %s2347_s1 = inlined_call_operand.vmem [shape: s32[128,1], index: 1, kind: input, shape index: {}]   ;;  %s2348_s2 = inlined_call_operand.vmem [shape: f32[4,1], index: 2, kind: input, shape index: {}]   ;;  %s2349_s3 = inlined_call_operand.vmem [shape: bf16[16,64], index: 3, kind: input, shape index: {}]   ;;  %s2350_s4 = inlined_call_operand.vmem [shape: f32[1,64], index: 4, kind: input, shape index: {}]   ;;  %s2351_s5 = inlined_call_operand.vmem [shape: bf16[64,64], index: 5, kind: input, shape index: {}]   ;;  %s2352_s6 = inlined_call_operand.vmem [shape: f32[1,64], index: 6, kind: input, shape index: {}]   ;;  %s2353_s7 = inlined_call_operand.vmem [shape: bf16[64,128], index: 7, kind: input, shape index: {}]   ;;  %s2354_s8 = inlined_call_operand.vmem [shape: bf16[64,128], index: 8, kind: input, shape index: {}]   ;;  %s2355_s9 = inlined_call_operand.vmem [shape: f32[1,128], index: 9, kind: input, shape index: {}]   ;;  %s2356_s10 = inlined_call_operand.vmem [shape: bf16[128,2], index: 10, kind: input, shape index: {}]   ;;  %s2357_s11 = inlined_call_operand.vmem [shape: f32[1,2], index: 11, kind: input, shape index: {}]   ;;  %s2358_s12 = inlined_call_operand.vmem [shape: f32[4,2], index: 12, kind: output, shape index: {}]  }
   0x1 LB: > { %s1755_s22 = sadd.s32 4294967295, %s1676_s21   ;;  %p1474_p0 = scmp.ge.s32.totalorder %s1676_s21, 1  ;;  %s1676_s21 = sphi %s1749_s21, %s22_s21  }
   0x2   : > { %p369_p1 = scmp.lt.s32.totalorder %s1676_s21, 3 }
   0x4   : > { %p370_p2 = pnand %p1474_p0, %p369_p1 }
   0x5   : > { %s1475_s23 = sshll.u32 (!%p370_p2), %s1755_s22, 3  ;;  %p1479_p4 = scmp.ne.s32.totalorder (!%p370_p2), %s1755_s22, 0 }
   0x6   : > { %373 = sbr.rel (%p370_p2) target bundleno = 1346 (0x542), region = 68  ;;  %p412_p3 = scmp.lt.s32.totalorder (!%p370_p2), %s1475_s23, 15 }
   0xb   : > { %s2360_s23 = smov (!%p412_p3, %s1475_s23), 15  ;;  %427 = sbr.rel (%p1479_p4) target bundleno = 18 (0x12), region = 72 }
   0xc   : > { %s1476_s24 = sshll.u32 %s2360_s23, 3 }
   0xd   : > { %s1763_s27 = scalar_lea.vmem %s2346_s0, %s1476_s24  ;;  %s1768_s30 = scalar_lea.vmem %s2347_s1, %s1476_s24 }
  0x10   : > { %vm428_vm0 = vcmask 519168   ;;  %v1678_v0 = vmov 0.0   ;;  %v1679_v1 = vmov -1e+30  }
  0x11   : > { %429 = vst.msk [vmem:[#allocation2] sm:$0xf] %vm428_vm0, %v1678_v0  ;;  %430 = vst.msk [vmem:[#allocation3] sm:$0xf] %vm428_vm0, %v1679_v1 }
  0x12 PF: > { %v1644_v2 = vld [vmem:[%s2349_s3] sm:$0xff]   ;;  %v432_v4 = vld [vmem:[%s1763_s27 + $0x8] sm:$0xff]  ;;  %vm458_vm1 = vcmask 130048   ;;  %v433_v5 = vld [vmem:[%s1763_s27 + $0x10] sm:$0xff]  ;;  %v1680_v10 = vmov 0   ;;  %p1495_p5 = scmp.ne.s32.totalorder %s1755_s22, 1 }
  0x13   : > { %v431_v3 = vld [vmem:[%s1763_s27] sm:$0xff]  ;;  %1550 = vmatprep.subr.bf16.mxu0 %v1644_v2  ;;  %v434_v7 = vld [vmem:[%s1763_s27 + $0x18] sm:$0xff]  ;;  %v436_v9 = vld [vmem:[%s1763_s27 + $0x28] sm:$0xff]  ;;  %1643 = vset.pattern.permute.xlu1 %v1680_v10 }
  0x14   : > { %v439_v6 = vpack.c.bf16 %v432_v4, %v431_v3  ;;  %v435_v8 = vld [vmem:[%s1763_s27 + $0x20] sm:$0xff]  ;;  %1551 = vmatpush3.bf16.msra.mxu0 %v1644_v2  ;;  %v440_v11 = vpack.c.bf16 %v434_v7, %v433_v5  ;;  %1642 = vset.pattern.permute.xlu0 %v1680_v10  ;;  %v1783_v13 = vld [vmem:[%s1768_s30 + $0x10] sm:$0xff]  ;;  %v1789_v15 = vld [vmem:[%s1768_s30 + $0x18] sm:$0xff] }
  0x15   : > { %v441_v12 = vpack.c.bf16 %v436_v9, %v435_v8  ;;  %vm683_vm2 = vcmp.eq.s32.totalorder %v1783_v13, 0  ;;  %v673_v14 = vld [vmem:[%s1768_s30] sm:$0xff]  ;;  %v674_v16 = vld [vmem:[%s1768_s30 + $0x8] sm:$0xff]  ;;  %vm684_vm4 = vcmp.eq.s32.totalorder %v1789_v15, 0  ;;  %v437_v21 = vld [vmem:[%s1763_s27 + $0x30] sm:$0xff]  ;;  %vm908_vm0 = vcmp.eq.s32.totalorder %v1783_v13, 2 }
  0x16   : > { %1552 = vmatprep.mubr.msk.bf16.mxu0 %vm458_vm1, %v439_v6  ;;  %v691_v17 = vsel %vm683_vm2, 1, %v1680_v10  ;;  %vm681_vm3 = vcmp.eq.s32.totalorder %v673_v14, 0  ;;  %vm682_vm5 = vcmp.eq.s32.totalorder %v674_v16, 0  ;;  %v1795_v18 = vld [vmem:[%s1768_s30 + $0x28] sm:$0xff]  ;;  %v1800_v20 = vld [vmem:[%s1768_s30 + $0x20] sm:$0xff]  ;;  %v438_v22 = vld [vmem:[%s1763_s27 + $0x38] sm:$0xff] }
  0x17   : > { %1553 = vmatmul.mubr.msk.bf16.vlgmr.msra.gmra.mxu0 %vm458_vm1, %v440_v11  ;;  %704 = vperm.xlu1 %1643, %v691_v17   ;;  %v689_v19 = vsel %vm681_vm3, 1, %v1680_v10  ;;  %v692_v23 = vsel %vm684_vm4, 1, %v1680_v10  ;;  %vm686_vm6 = vcmp.eq.s32.totalorder %v1795_v18, 0  ;;  %v690_v24 = vsel %vm682_vm5, 1, %v1680_v10  ;;  %v1810_v25 = vld [vmem:[%s1768_s30 + $0x38] sm:$0xff]  ;;  %v1817_v29 = vld [vmem:[%s1768_s30 + $0x30] sm:$0xff] }
  0x18   : > { %1556 = vmatprep.mubr.msk.bf16.mxu0 %vm458_vm1, %v441_v12  ;;  %698 = vperm.xlu0 %1642, %v689_v19   ;;  %vm685_vm7 = vcmp.eq.s32.totalorder %v1800_v20, 0  ;;  %v1645_v26 = vld [vmem:[%s2351_s5 + $0x18] sm:$0xff]   ;;  %v442_v27 = vpack.c.bf16 %v438_v22, %v437_v21  ;;  %v694_v28 = vsel %vm686_vm6, 1, %v1680_v10  ;;  %vm688_vm8 = vcmp.eq.s32.totalorder %v1810_v25, 0  ;;  %v1646_v37 = vld [vmem:[%s2351_s5 + $0x10] sm:$0xff]   ;;  %v1647_v40 = vld [vmem:[%s2351_s5 + $0x8] sm:$0xff]  }
  0x19   : > { %1560 = vmatprep.subr.bf16.mxu0 %v1645_v26  ;;  %v693_v30 = vsel %vm685_vm7, 1, %v1680_v10  ;;  %1620 = vmatprep.subr.bf16.mxu1 %v1645_v26  ;;  %vm687_vm9 = vcmp.eq.s32.totalorder %v1817_v29, 0  ;;  %v696_v31 = vsel %vm688_vm8, 1, %v1680_v10  ;;  %vm795_vm10 = vcmp.eq.s32.totalorder %v674_v16, 1  ;;  %v1648_v43 = vld [vmem:[%s2351_s5] sm:$0xff]  }
  0x1a   : > { %1561 = vmatpush3.bf16.msra.mxu0 %v1645_v26  ;;  %1624 = vmatpush3.bf16.msra.mxu1 %v1645_v26  ;;  %v695_v32 = vsel %vm687_vm9, 1, %v1680_v10  ;;  %vm794_vm11 = vcmp.eq.s32.totalorder %v673_v14, 1  ;;  %v803_v33 = vsel %vm795_vm10, 1, %v1680_v10  ;;  %vm907_vm12 = vcmp.eq.s32.totalorder %v674_v16, 2  ;;  %v1480_v62 = vld [vmem:[%s2350_s4] ss:$0 sm:$0xff] }
  0x1b   : > { %707 = vperm.xlu1 %1643, %v692_v23   ;;  %v802_v34 = vsel %vm794_vm11, 1, %v1680_v10  ;;  %vm906_vm13 = vcmp.eq.s32.totalorder %v673_v14, 2  ;;  %v915_v35 = vsel %vm907_vm12, 1, %v1680_v10  ;;  %1562 = vmatprep.subr.bf16.mxu0 %v1646_v37  ;;  %vm1019_vm14 = vcmp.eq.s32.totalorder %v674_v16, 3 }
  0x1c   : > { %701 = vperm.xlu0 %1642, %v690_v24   ;;  %v914_v36 = vsel %vm906_vm13, 1, %v1680_v10  ;;  %vm1018_vm15 = vcmp.eq.s32.totalorder %v673_v14, 3  ;;  %1621 = vmatprep.subr.bf16.mxu1 %v1646_v37  ;;  %v1027_v38 = vsel %vm1019_vm14, 1, %v1680_v10  ;;  %v916_v41 = vsel %vm908_vm0, 1, %v1680_v10 }
  0x1d   : > { %v1026_v39 = vsel %vm1018_vm15, 1, %v1680_v10  ;;  %vm797_vm2 = vcmp.eq.s32.totalorder %v1789_v15, 1  ;;  %vm1020_vm3 = vcmp.eq.s32.totalorder %v1783_v13, 3  ;;  %vm1021_vm4 = vcmp.eq.s32.totalorder %v1789_v15, 3 }
  0x1e   : > { %1563 = vmatpush3.bf16.msra.mxu0 %v1646_v37  ;;  %1625 = vmatpush3.bf16.msra.mxu1 %v1646_v37  ;;  %v805_v44 = vsel %vm797_vm2, 1, %v1680_v10  ;;  %v1028_v45 = vsel %vm1020_vm3, 1, %v1680_v10  ;;  %vm909_vm5 = vcmp.eq.s32.totalorder %v1789_v15, 2  ;;  %v1029_v46 = vsel %vm1021_vm4, 1, %v1680_v10 }
  0x1f   : > { %1557 = vmatmul.mubr.msk.bf16.gmra.mxu0 %vm458_vm1, %v442_v27  ;;  %713 = vperm.xlu1 %1643, %v694_v28   ;;  %vm796_vm1 = vcmp.eq.s32.totalorder %v1783_v13, 1  ;;  %v917_v47 = vsel %vm909_vm5, 1, %v1680_v10  ;;  %vm910_vm6 = vcmp.eq.s32.totalorder %v1800_v20, 2  ;;  %vm798_vm7 = vcmp.eq.s32.totalorder %v1800_v20, 1 }
  0x20   : > { %710 = vperm.xlu0 %1642, %v693_v30   ;;  %1564 = vmatprep.subr.bf16.mxu0 %v1647_v40  ;;  %v804_v42 = vsel %vm796_vm1, 1, %v1680_v10  ;;  %v918_v48 = vsel %vm910_vm6, 1, %v1680_v10  ;;  %v806_v49 = vsel %vm798_vm7, 1, %v1680_v10  ;;  %vm799_vm8 = vcmp.eq.s32.totalorder %v1795_v18, 1 }
  0x21   : > { %1622 = vmatprep.subr.bf16.mxu1 %v1647_v40  ;;  %vm1022_vm9 = vcmp.eq.s32.totalorder %v1800_v20, 3  ;;  %vm801_vm10 = vcmp.eq.s32.totalorder %v1810_v25, 1  ;;  %vm800_vm11 = vcmp.eq.s32.totalorder %v1817_v29, 1  ;;  %v807_v50 = vsel %vm799_vm8, 1, %v1680_v10 }
  0x22   : > { %1565 = vmatpush3.bf16.msra.mxu0 %v1647_v40  ;;  %1626 = vmatpush3.bf16.msra.mxu1 %v1647_v40  ;;  %v1030_v51 = vsel %vm1022_vm9, 1, %v1680_v10  ;;  %v809_v52 = vsel %vm801_vm10, 1, %v1680_v10  ;;  %v808_v53 = vsel %vm800_vm11, 1, %v1680_v10  ;;  %vm912_vm12 = vcmp.eq.s32.totalorder %v1817_v29, 2 }
  0x23   : > { %719 = vperm.xlu1 %1643, %v696_v31   ;;  %1566 = vmatprep.subr.bf16.mxu0 %v1648_v43  ;;  %vm911_vm13 = vcmp.eq.s32.totalorder %v1795_v18, 2  ;;  %v920_v54 = vsel %vm912_vm12, 1, %v1680_v10  ;;  %vm1023_vm14 = vcmp.eq.s32.totalorder %v1795_v18, 3  ;;  %vm913_vm15 = vcmp.eq.s32.totalorder %v1810_v25, 2 }
  0x24   : > { %716 = vperm.xlu0 %1642, %v695_v32   ;;  %1623 = vmatprep.subr.bf16.mxu1 %v1648_v43  ;;  %v919_v55 = vsel %vm911_vm13, 1, %v1680_v10  ;;  %v1031_v56 = vsel %vm1023_vm14, 1, %v1680_v10  ;;  %v921_v57 = vsel %vm913_vm15, 1, %v1680_v10  ;;  %vm1025_vm0 = vcmp.eq.s32.totalorder %v1810_v25, 3 }
  0x25   : > { %vm1024_vm1 = vcmp.eq.s32.totalorder %v1817_v29, 3  ;;  %v1033_v58 = vsel %vm1025_vm0, 1, %v1680_v10  ;;  %vm587_vm2 = vcmask 523264  }
  0x26   : > { %1567 = vmatpush3.bf16.msra.mxu0 %v1648_v43  ;;  %1627 = vmatpush3.bf16.msra.mxu1 %v1648_v43  ;;  %v1032_v59 = vsel %vm1024_vm1, 1, %v1680_v10 }
  0x27   : > { %814 = vperm.xlu1 %1643, %v803_v33  }
  0x28   : > { %811 = vperm.xlu0 %1642, %v802_v34  }
  0x2b   : > { %926 = vperm.xlu1 %1643, %v915_v35  }
  0x2c   : > { %923 = vperm.xlu0 %1642, %v914_v36  }
  0x2f   : > { %1038 = vperm.xlu1 %1643, %v1027_v38  }
  0x30   : > { %1035 = vperm.xlu0 %1642, %v1026_v39  }
  0x33   : > { %929 = vperm.xlu1 %1643, %v916_v41  }
  0x34   : > { %817 = vperm.xlu0 %1642, %v804_v42  }
  0x37   : > { %820 = vperm.xlu1 %1643, %v805_v44  }
  0x38   : > { %1041 = vperm.xlu0 %1642, %v1028_v45  }
  0x3b   : > { %1044 = vperm.xlu1 %1643, %v1029_v46  }
  0x3c   : > { %932 = vperm.xlu0 %1642, %v917_v47   ;;  %v1922_v47 = vld [vmem:[%s2352_s6] ss:$0 sm:$0xff] }
  0x3f   : > { %935 = vperm.xlu1 %1643, %v918_v48  }
  0x40   : > { %823 = vperm.xlu0 %1642, %v806_v49  }
  0x43   : > { %826 = vperm.xlu1 %1643, %v807_v50  }
  0x44   : > { %1047 = vperm.xlu0 %1642, %v1030_v51  }
  0x47   : > { %832 = vperm.xlu1 %1643, %v809_v52  }
  0x48   : > { %829 = vperm.xlu0 %1642, %v808_v53  }
  0x4b   : > { %941 = vperm.xlu1 %1643, %v920_v54  }
  0x4c   : > { %938 = vperm.xlu0 %1642, %v919_v55  }
  0x4f   : > { %1050 = vperm.xlu1 %1643, %v1031_v56  }
  0x50   : > { %944 = vperm.xlu0 %1642, %v921_v57  }
  0x53   : > { %1056 = vperm.xlu1 %1643, %v1033_v58  }
  0x54   : > { %1053 = vperm.xlu0 %1642, %v1032_v59  }
  0x92   : > { %v705_v28 = vpop.permute.xlu1 %704 }
  0x93   : > { %v1883_v25 = vpop.permute.xlu0 %698  ;;  %vm723_vm3 = vcmp.eq.s32.totalorder %v705_v28, 1 }
  0x94   : > { %vm721_vm4 = vcmp.eq.s32.totalorder %v1883_v25, 1 }
  0x96   : > { %v1891_v30 = vpop.permute.xlu1 %707 }
  0x97   : > { %v1885_v26 = vpop.permute.xlu0 %701  ;;  %vm724_vm9 = vcmp.eq.s32.totalorder %v1891_v30, 1 }
  0x98   : > { %vm722_vm15 = vcmp.eq.s32.totalorder %v1885_v26, 1 }
  0x9a   : > { %v1895_v32 = vpop.permute.xlu1 %713 }
  0x9b   : > { %v1887_v27 = vpop.permute.xlu0 %710 }
  0x9e   : > { %v1899_v34 = vpop.permute.xlu1 %719 }
  0x9f   : > { %v1889_v29 = vpop.permute.xlu0 %716 }
  0xa2   : > { %v1903_v36 = vpop.permute.xlu1 %814 }
  0xa3   : > { %v1893_v31 = vpop.permute.xlu0 %811  ;;  %vm835_vm0 = vcmp.eq.s32.totalorder %v1903_v36, 1 }
  0xa4   : > { %vm834_vm5 = vcmp.eq.s32.totalorder %v1893_v31, 1 }
  0xa6   : > { %v1905_v38 = vpop.permute.xlu1 %926 }
  0xa7   : > { %v1897_v33 = vpop.permute.xlu0 %923  ;;  %vm947_vm1 = vcmp.eq.s32.totalorder %v1905_v38, 1 }
  0xa8   : > { %vm946_vm7 = vcmp.eq.s32.totalorder %v1897_v33, 1 }
  0xaa   : > { %v1907_v40 = vpop.permute.xlu1 %1038 }
  0xab   : > { %v1901_v35 = vpop.permute.xlu0 %1035 }
  0xac   : > { %vm1058_vm10 = vcmp.eq.s32.totalorder %v1901_v35, 1 }
  0xae   : > { %v930_v42 = vpop.permute.xlu1 %929 }
  0xaf   : > { %v818_v37 = vpop.permute.xlu0 %817  ;;  %vm948_vm8 = vcmp.eq.s32.totalorder %v930_v42, 1 }
  0xb0   : > { %vm836_vm6 = vcmp.eq.s32.totalorder %v818_v37, 1 }
  0xb2   : > { %v1913_v44 = vpop.permute.xlu1 %820 }
  0xb3   : > { %v1042_v39 = vpop.permute.xlu0 %1041  ;;  %vm837_vm11 = vcmp.eq.s32.totalorder %v1913_v44, 1 }
  0xb4   : > { %vm1060_vm12 = vcmp.eq.s32.totalorder %v1042_v39, 1 }
  0xb6   : > { %v1917_v46 = vpop.permute.xlu1 %1044 }
  0xb7   : > { %v1909_v41 = vpop.permute.xlu0 %932  ;;  %vm1061_vm14 = vcmp.eq.s32.totalorder %v1917_v46, 1 }
  0xb8   : > { %vm949_vm13 = vcmp.eq.s32.totalorder %v1909_v41, 1 }
  0xba   : > { %v1926_v50 = vpop.permute.xlu1 %935 }
  0xbb   : > { %v1911_v43 = vpop.permute.xlu0 %823 }
  0xbe   : > { %v1935_v59 = vpop.permute.xlu1 %826 }
  0xbf   : > { %v1915_v45 = vpop.permute.xlu0 %1047 }
  0xc3   : > { %v1924_v48 = vpop.permute.xlu0 %829 }
  0xc7   : > { %v1930_v54 = vpop.permute.xlu0 %938 }
  0xd7   : > { %v1554_v60 = vpop.f32.mrf.mxu0 }
  0xd8   : > { %v514_v2 = vadd.f32 %v1554_v60, %v1480_v62 }
  0xd9   : > { %v505_v61 = vpop.f32.mrf.mxu0 }
  0xda   : > { %v506_v0 = vadd.f32 %v1480_v62, %v505_v61  ;;  %v538_v9 = vmax.f32 %v514_v2, 0.0 }
  0xdb   : > { %v1555_v63 = vpop.f32.mrf.mxu0 }
  0xdc   : > { %v517_v1 = vadd.f32 %v1555_v63, %v1480_v62  ;;  %v536_v7 = vmax.f32 %v506_v0, 0.0 }
  0xdd   : > { %v508_v3 = vpop.f32.mrf.mxu0 }
  0xde   : > { %v509_v4 = vadd.f32 %v1480_v62, %v508_v3  ;;  %v539_v5 = vmax.f32 %v517_v1, 0.0 }
  0xdf   : > { %v1558_v6 = vpop.f32.mrf.mxu0 }
  0xe0   : > { %v537_v8 = vmax.f32 %v509_v4, 0.0  ;;  %v545_v12 = vpack.c.bf16 %v539_v5, %v538_v9  ;;  %v530_v16 = vadd.f32 %v1558_v6, %v1480_v62 }
  0xe1   : > { %v521_v10 = vpop.f32.mrf.mxu0 }
  0xe2   : > { %v544_v11 = vpack.c.bf16 %v537_v8, %v536_v7  ;;  %v522_v14 = vadd.f32 %v1480_v62, %v521_v10  ;;  %v542_v22 = vmax.f32 %v530_v16, 0.0  ;;  %v1954_v10 = vpop.permute.xlu0 %944 }
  0xe3   : > { %v1559_v13 = vpop.f32.mrf.mxu0 }
  0xe4   : > { %v533_v15 = vadd.f32 %v1559_v13, %v1480_v62  ;;  %1568 = vmatprep.mubr.msk.bf16.mxu0 %vm587_vm2, %v544_v11  ;;  %v540_v20 = vmax.f32 %v522_v14, 0.0 }
  0xe5   : > { %v524_v17 = vpop.f32.mrf.mxu0  ;;  %1569 = vmatmul.mubr.msk.bf16.vlgmr.msra.gmra.mxu0 %vm587_vm2, %v545_v12 }
  0xe6   : > { %v525_v18 = vadd.f32 %v1480_v62, %v524_v17  ;;  %v543_v19 = vmax.f32 %v533_v15, 0.0 }
  0xe8   : > { %v541_v21 = vmax.f32 %v525_v18, 0.0  ;;  %v547_v24 = vpack.c.bf16 %v543_v19, %v542_v22 }
  0xea   : > { %v546_v23 = vpack.c.bf16 %v541_v21, %v540_v20  ;;  %v1974_v20 = vpop.permute.xlu1 %832 }
  0xec   : > { %1572 = vmatprep.mubr.msk.bf16.mxu1 %vm587_vm2, %v546_v23 }
  0xed   : > { %1573 = vmatmul.mubr.msk.bf16.vlgmr.msra.gmra.mxu1 %vm587_vm2, %v547_v24 }
 0x1a5   : > { %v1570_v49 = vpop.f32.mrf.mxu0 }
 0x1a6   : > { %v643_v51 = vadd.f32 %v1570_v49, %v1922_v47 }
 0x1a7   : > { %v634_v52 = vpop.f32.mrf.mxu0 }
 0x1a8   : > { %v667_v53 = vmax.f32 %v643_v51, 0.0  ;;  %v635_v55 = vadd.f32 %v1922_v47, %v634_v52 }
 0x1a9   : > { %v1571_v56 = vpop.f32.mrf.mxu0 }
 0x1aa   : > { %v731_v57 = vsel %vm723_vm3, %v667_v53, 0.0  ;;  %v760_v58 = vsel %vm723_vm3, %v667_v53, -1e+30  ;;  %v844_v60 = vsel %vm836_vm6, %v667_v53, 0.0  ;;  %v873_v61 = vsel %vm836_vm6, %v667_v53, -1e+30 }
 0x1ab   : > { %v956_v62 = vsel %vm948_vm8, %v667_v53, 0.0  ;;  %v1941_v0 = vsel %vm587_vm2, %v731_v57, 0.0  ;;  %v1944_v1 = vsel %vm587_vm2, %v760_v58, -inf  ;;  %v985_v2 = vsel %vm948_vm8, %v667_v53, -1e+30  ;;  %v637_v4 = vpop.f32.mrf.mxu0  ;;  %v2007_v57 = vpop.permute.xlu0 %1053 }
 0x1ac   : > { %v665_v3 = vmax.f32 %v635_v55, 0.0  ;;  %v1948_v5 = vsel %vm587_vm2, %v844_v60, 0.0  ;;  %v1951_v6 = vsel %vm587_vm2, %v873_v61, -inf  ;;  %v1068_v7 = vsel %vm1060_vm12, %v667_v53, 0.0 }
 0x1ad   : > { %v1574_v63 = vpop.f32.mrf.mxu1  ;;  %v1097_v8 = vsel %vm1060_vm12, %v667_v53, -1e+30  ;;  %v1957_v11 = vsel %vm587_vm2, %v956_v62, 0.0  ;;  %v646_v14 = vadd.f32 %v1571_v56, %v1922_v47  ;;  %v1967_v15 = vsel %vm587_vm2, %v985_v2, -inf }
 0x1ae   : > { %v729_v12 = vsel %vm721_vm4, %v665_v3, 0.0  ;;  %v758_v13 = vsel %vm721_vm4, %v665_v3, -1e+30  ;;  %v842_v16 = vsel %vm834_vm5, %v665_v3, 0.0  ;;  %v871_v17 = vsel %vm834_vm5, %v665_v3, -1e+30 }
 0x1af   : > { %v650_v9 = vpop.f32.mrf.mxu1  ;;  %v638_v18 = vadd.f32 %v1922_v47, %v637_v4  ;;  %v1977_v21 = vsel %vm587_vm2, %v1068_v7, 0.0  ;;  %v954_v22 = vsel %vm946_vm7, %v665_v3, 0.0  ;;  %v983_v23 = vsel %vm946_vm7, %v665_v3, -1e+30  ;;  %v942_v4 = vpop.permute.xlu1 %941 }
 0x1b0   : > { %v1066_v24 = vsel %vm1058_vm10, %v665_v3, 0.0  ;;  %v1987_v25 = vsel %vm587_vm2, %v1097_v8, -inf  ;;  %v737_v28 = vsel %vm587_vm2, %v729_v12, 0.0  ;;  %v1991_v31 = vsel %vm587_vm2, %v758_v13, -inf }
 0x1b1   : > { %v1575_v19 = vpop.f32.mrf.mxu1  ;;  %v659_v37 = vadd.f32 %v1574_v63, %v1922_v47  ;;  %vm1059_vm3 = vcmp.eq.s32.totalorder %v1907_v40, 1  ;;  %v850_v33 = vsel %vm587_vm2, %v842_v16, 0.0  ;;  %v1997_v39 = vsel %vm587_vm2, %v871_v17, -inf }
 0x1b2   : > { %v1095_v42 = vsel %vm1058_vm10, %v665_v3, -1e+30  ;;  %v668_v49 = vmax.f32 %v646_v14, 0.0  ;;  %v962_v51 = vsel %vm587_vm2, %v954_v22, 0.0  ;;  %v2003_v52 = vsel %vm587_vm2, %v983_v23, -inf }
 0x1b3   : > { %v1074_v53 = vsel %vm587_vm2, %v1066_v24, 0.0  ;;  %v666_v55 = vmax.f32 %v638_v18, 0.0  ;;  %v653_v56 = vpop.f32.mrf.mxu1  ;;  %vm727_vm4 = vcmp.eq.s32.totalorder %v1889_v29, 1  ;;  %v2018_v62 = vsel %vm587_vm2, %v1095_v42, -inf }
 0x1b4   : > { %v732_v58 = vsel %vm724_vm9, %v668_v49, 0.0  ;;  %v761_v35 = vsel %vm724_vm9, %v668_v49, -1e+30  ;;  %v845_v60 = vsel %vm837_vm11, %v668_v49, 0.0  ;;  %v874_v61 = vsel %vm837_vm11, %v668_v49, -1e+30 }
 0x1b5   : > { %v671_v63 = vmax.f32 %v659_v37, 0.0  ;;  %v651_v2 = vadd.f32 %v1922_v47, %v650_v9  ;;  %v2022_v3 = vadd.f32 %v1575_v19, %v1922_v47  ;;  %vm840_vm5 = vcmp.eq.s32.totalorder %v1924_v48, 1 }
 0x1b6   : > { %v2026_v30 = vsel %vm587_vm2, %v732_v58, 0.0  ;;  %v957_v7 = vsel %vm949_vm13, %v668_v49, 0.0  ;;  %v986_v44 = vsel %vm949_vm13, %v668_v49, -1e+30  ;;  %v2033_v8 = vadd.f32 %v1922_v47, %v653_v56 }
 0x1b7   : > { %vm952_vm6 = vcmp.eq.s32.totalorder %v942_v4, 1  ;;  %vm1064_vm7 = vcmp.eq.s32.totalorder %v2007_v57, 1  ;;  %v2037_v9 = vsel %vm587_vm2, %v761_v35, -inf  ;;  %v2040_v12 = vsel %vm587_vm2, %v845_v60, 0.0  ;;  %v2084_v60 = vpop.permute.xlu1 %1050 }
 0x1b8   : > { %v2043_v13 = vsel %vm587_vm2, %v874_v61, -inf  ;;  %v1069_v14 = vsel %vm1061_vm14, %v668_v49, 0.0  ;;  %v2048_v41 = vsel %vm587_vm2, %v957_v7, 0.0  ;;  %v1098_v47 = vsel %vm1061_vm14, %v668_v49, -1e+30 }
 0x1b9   : > { %v730_v16 = vsel %vm722_vm15, %v666_v55, 0.0  ;;  %v843_v17 = vsel %vm835_vm0, %v666_v55, 0.0  ;;  %v2057_v18 = vsel %vm587_vm2, %v986_v44, -inf  ;;  %v759_v22 = vsel %vm722_vm15, %v666_v55, -1e+30 }
 0x1ba   : > { %v738_v19 = vsel %vm587_vm2, %v730_v16, 0.0  ;;  %v851_v23 = vsel %vm587_vm2, %v843_v17, 0.0  ;;  %v872_v46 = vsel %vm835_vm0, %v666_v55, -1e+30  ;;  %v955_v42 = vsel %vm947_vm1, %v666_v55, 0.0 }
 0x1bb   : > { %v739_v24 = vadd.f32 %v738_v19, %v737_v28  ;;  %v852_v37 = vadd.f32 %v851_v23, %v850_v33  ;;  %vm725_vm8 = vcmp.eq.s32.totalorder %v1887_v27, 1  ;;  %v1079_v49 = vsel %vm587_vm2, %v1069_v14, 0.0 }
 0x1bc   : > { %v963_v56 = vsel %vm587_vm2, %v955_v42, 0.0  ;;  %v984_v26 = vsel %vm947_vm1, %v666_v55, -1e+30  ;;  %v1067_v58 = vsel %vm1059_vm3, %v666_v55, 0.0  ;;  %vm838_vm9 = vcmp.eq.s32.totalorder %v1911_v43, 1 }
 0x1bd   : > { %v2076_v36 = vsel %vm587_vm2, %v1098_v47, -inf  ;;  %v2079_v28 = vsel %vm587_vm2, %v759_v22, -inf  ;;  %v1075_v33 = vsel %vm587_vm2, %v1067_v58, 0.0  ;;  %v1096_v35 = vsel %vm1059_vm3, %v666_v55, -1e+30 }
 0x1be   : > { %v2087_v38 = vsel %vm587_vm2, %v872_v46, -inf  ;;  %v964_v61 = vadd.f32 %v963_v56, %v962_v51  ;;  %v1076_v7 = vadd.f32 %v1075_v33, %v1074_v53  ;;  %v764_v44 = vsel %vm727_vm4, %v671_v63, -1e+30 }
 0x1bf   : > { %vm950_vm10 = vcmp.eq.s32.totalorder %v1926_v50, 1  ;;  %vm1062_vm11 = vcmp.eq.s32.totalorder %v1915_v45, 1  ;;  %v741_v14 = vadd.f32 %v1941_v0, %v739_v24  ;;  %v854_v47 = vadd.f32 %v1948_v5, %v852_v37 }
 0x1c0   : > { %v2096_v40 = vsel %vm587_vm2, %v984_v26, -inf  ;;  %v735_v55 = vsel %vm727_vm4, %v671_v63, 0.0  ;;  %v2101_v51 = vsel %vm587_vm2, %v1096_v35, -inf  ;;  %v2104_v53 = vsel %vm587_vm2, %v764_v44, -inf }
 0x1c1   : > { %v848_v16 = vsel %vm840_vm5, %v671_v63, 0.0  ;;  %v877_v0 = vsel %vm840_vm5, %v671_v63, -1e+30  ;;  %v960_v17 = vsel %vm952_vm6, %v671_v63, 0.0  ;;  %v989_v29 = vsel %vm952_vm6, %v671_v63, -1e+30 }
 0x1c2   : > { %v2111_v5 = vsel %vm587_vm2, %v877_v0, -inf  ;;  %v1072_v19 = vsel %vm1064_vm7, %v671_v63, 0.0  ;;  %v966_v22 = vadd.f32 %v1957_v11, %v964_v61  ;;  %v1078_v23 = vadd.f32 %v1977_v21, %v1076_v7  ;;  %v1057_v11 = vpop.permute.xlu1 %1056 }
 0x1c3   : > { %v2120_v24 = vsel %vm587_vm2, %v735_v55, 0.0  ;;  %v2123_v48 = vsel %vm587_vm2, %v989_v29, -inf  ;;  %v775_v37 = vmax.f32 %v1944_v1, %v2104_v53  ;;  %v2128_v46 = vsel %vm587_vm2, %v848_v16, 0.0 }
 0x1c4   : > { %v1101_v4 = vsel %vm1064_vm7, %v671_v63, -1e+30  ;;  %v669_v42 = vmax.f32 %v651_v2, 0.0  ;;  %vm728_vm12 = vcmp.eq.s32.totalorder %v1899_v34, 1  ;;  %vm841_vm13 = vcmp.eq.s32.totalorder %v1974_v20, 1 }
 0x1c5   : > { %v888_v21 = vmax.f32 %v1951_v6, %v2111_v5  ;;  %v2137_v56 = vsel %vm587_vm2, %v960_v17, 0.0  ;;  %v2140_v26 = vsel %vm587_vm2, %v1072_v19, 0.0  ;;  %v2143_v58 = vsel %vm587_vm2, %v1101_v4, -inf }
 0x1c6   : > { %v1000_v57 = vmax.f32 %v1967_v15, %v2123_v48  ;;  %v733_v63 = vsel %vm725_vm8, %v669_v42, 0.0  ;;  %v743_v2 = vadd.f32 %v2026_v30, %v741_v14  ;;  %v762_v6 = vsel %vm725_vm8, %v669_v42, -1e+30 }
 0x1c7   : > { %vm953_vm14 = vcmp.eq.s32.totalorder %v1954_v10, 1  ;;  %v846_v33 = vsel %vm838_vm9, %v669_v42, 0.0  ;;  %v856_v35 = vadd.f32 %v2040_v12, %v854_v47  ;;  %v875_v61 = vsel %vm838_vm9, %v669_v42, -1e+30 }
 0x1c8   : > { %v968_v15 = vadd.f32 %v2048_v41, %v966_v22  ;;  %vm1065_vm15 = vcmp.eq.s32.totalorder %v1057_v11, 1  ;;  %v1112_v7 = vmax.f32 %v1987_v25, %v2143_v58  ;;  %v744_v30 = vsel %vm587_vm2, %v733_v63, 0.0 }
 0x1c9   : > { %v2163_v27 = vsel %vm587_vm2, %v762_v6, -inf  ;;  %v1080_v44 = vadd.f32 %v1079_v49, %v1078_v23  ;;  %v2166_v14 = vsel %vm587_vm2, %v875_v61, -inf  ;;  %v958_v12 = vsel %vm950_vm10, %v669_v42, 0.0 }
 0x1ca   : > { %v987_v43 = vsel %vm950_vm10, %v669_v42, -1e+30  ;;  %v1070_v41 = vsel %vm1062_vm11, %v669_v42, 0.0  ;;  %vm726_vm0 = vcmp.eq.s32.totalorder %v1895_v32, 1  ;;  %vm839_vm1 = vcmp.eq.s32.totalorder %v1935_v59, 1 }
 0x1cb   : > { %v745_v25 = vadd.f32 %v744_v30, %v743_v2  ;;  %v857_v47 = vsel %vm587_vm2, %v846_v33, 0.0  ;;  %v2178_v49 = vsel %vm587_vm2, %v987_v43, -inf  ;;  %v1099_v55 = vsel %vm1062_vm11, %v669_v42, -1e+30 }
 0x1cc   : > { %v771_v50 = vmax.f32 %v1991_v31, %v2163_v27  ;;  %v858_v16 = vadd.f32 %v857_v47, %v856_v35  ;;  %v969_v0 = vsel %vm587_vm2, %v958_v12, 0.0  ;;  %v2186_v5 = vsel %vm587_vm2, %v1099_v55, -inf }
 0x1cd   : > { %v884_v17 = vmax.f32 %v1997_v39, %v2166_v14  ;;  %v970_v29 = vadd.f32 %v969_v0, %v968_v15  ;;  %v1081_v19 = vsel %vm587_vm2, %v1070_v41, 0.0  ;;  %v672_v22 = vmax.f32 %v2022_v3, 0.0 }
 0x1ce   : > { %vm951_vm3 = vcmp.eq.s32.totalorder %v1930_v54, 1  ;;  %v996_v45 = vmax.f32 %v2003_v52, %v2178_v49  ;;  %v1082_v31 = vadd.f32 %v1081_v19, %v1080_v44  ;;  %v1108_v23 = vmax.f32 %v2018_v62, %v2186_v5 }
 0x1cf   : > { %v670_v48 = vmax.f32 %v2033_v8, 0.0  ;;  %v736_v4 = vsel %vm728_vm12, %v672_v22, 0.0  ;;  %v765_v39 = vsel %vm728_vm12, %v672_v22, -1e+30  ;;  %v849_v3 = vsel %vm841_vm13, %v672_v22, 0.0 }
 0x1d0   : > { %v878_v42 = vsel %vm841_vm13, %v672_v22, -1e+30  ;;  %vm1063_vm4 = vcmp.eq.s32.totalorder %v2084_v60, 1  ;;  %v750_v58 = vsel %vm587_vm2, %v736_v4, 0.0  ;;  %v776_v63 = vsel %vm587_vm2, %v765_v39, -inf }
 0x1d1   : > { %v863_v8 = vsel %vm587_vm2, %v849_v3, 0.0  ;;  %v889_v2 = vsel %vm587_vm2, %v878_v42, -inf  ;;  %v777_v6 = vmax.f32 %v2037_v9, %v776_v63  ;;  %v961_v33 = vsel %vm953_vm14, %v672_v22, 0.0 }
 0x1d2   : > { %v890_v34 = vmax.f32 %v2043_v13, %v889_v2  ;;  %v990_v20 = vsel %vm953_vm14, %v672_v22, -1e+30  ;;  %v975_v35 = vsel %vm587_vm2, %v961_v33, 0.0  ;;  %v1073_v15 = vsel %vm1065_vm15, %v672_v22, 0.0 }
 0x1d3   : > { %v1001_v61 = vsel %vm587_vm2, %v990_v20, -inf  ;;  %v1102_v30 = vsel %vm1065_vm15, %v672_v22, -1e+30  ;;  %v779_v9 = vmax.f32 %v775_v37, %v777_v6  ;;  %v1087_v44 = vsel %vm587_vm2, %v1073_v15, 0.0 }
 0x1d4   : > { %v892_v27 = vmax.f32 %v888_v21, %v890_v34  ;;  %v1002_v13 = vmax.f32 %v2057_v18, %v1001_v61  ;;  %v1113_v10 = vsel %vm587_vm2, %v1102_v30, -inf  ;;  %v734_v14 = vsel %vm726_vm0, %v670_v48, 0.0 }
 0x1d5   : > { %v763_v12 = vsel %vm726_vm0, %v670_v48, -1e+30  ;;  %v847_v11 = vsel %vm839_vm1, %v670_v48, 0.0  ;;  %v1114_v1 = vmax.f32 %v2076_v36, %v1113_v10  ;;  %v746_v53 = vsel %vm587_vm2, %v734_v14, 0.0 }
 0x1d6   : > { %v1004_v43 = vmax.f32 %v1000_v57, %v1002_v13  ;;  %v772_v18 = vsel %vm587_vm2, %v763_v12, -inf  ;;  %v747_v37 = vadd.f32 %v746_v53, %v745_v25  ;;  %v859_v41 = vsel %vm587_vm2, %v847_v11, 0.0 }
 0x1d7   : > { %v773_v21 = vmax.f32 %v2079_v28, %v772_v18  ;;  %v876_v47 = vsel %vm839_vm1, %v670_v48, -1e+30  ;;  %v1116_v32 = vmax.f32 %v1112_v7, %v1114_v1  ;;  %v860_v55 = vadd.f32 %v859_v41, %v858_v16 }
 0x1d8   : > { %v885_v0 = vsel %vm587_vm2, %v876_v47, -inf  ;;  %v959_v57 = vsel %vm951_vm3, %v670_v48, 0.0  ;;  %v749_v36 = vadd.f32 %v2120_v24, %v747_v37  ;;  %v988_v59 = vsel %vm951_vm3, %v670_v48, -1e+30  ;;  %v787_v37 = vld [vmem:[#allocation2] sm:$0x1] }
 0x1d9   : > { %v778_v19 = vmax.f32 %v771_v50, %v773_v21  ;;  %v886_v22 = vmax.f32 %v2087_v38, %v885_v0  ;;  %v971_v25 = vsel %vm587_vm2, %v959_v57, 0.0  ;;  %v862_v28 = vadd.f32 %v2128_v46, %v860_v55  ;;  %v791_v21 = vld [vmem:[#allocation3] sm:$0x1] }
 0x1da   : > { %v972_v4 = vadd.f32 %v971_v25, %v970_v29  ;;  %v1071_v7 = vsel %vm1063_vm4, %v670_v48, 0.0  ;;  %v751_v16 = vadd.f32 %v750_v58, %v749_v36  ;;  %v997_v42 = vsel %vm587_vm2, %v988_v59, -inf }
 0x1db   : > { %v780_v39 = vmax.f32 %v778_v19, %v779_v9  ;;  %v891_v3 = vmax.f32 %v884_v17, %v886_v22  ;;  %v864_v24 = vadd.f32 %v863_v8, %v862_v28  ;;  %v998_v38 = vmax.f32 %v2096_v40, %v997_v42  ;;  %v900_v19 = vld [vmem:[#allocation2 + $0x1] sm:$0x1]  ;;  %v903_v28 = vld [vmem:[#allocation3 + $0x1] sm:$0x1] }
 0x1dc   : > { %v974_v50 = vadd.f32 %v2137_v56, %v972_v4  ;;  %v1083_v63 = vsel %vm587_vm2, %v1071_v7, 0.0  ;;  %v752_v46 = vrot.slane %v751_v16, 4  ;;  %v1100_v17 = vsel %vm1063_vm4, %v670_v48, -1e+30 }
 0x1dd   : > { %v781_v29 = vrot.slane %v780_v39, 4  ;;  %v893_v2 = vmax.f32 %v891_v3, %v892_v27  ;;  %v1084_v54 = vadd.f32 %v1083_v63, %v1082_v31  ;;  %v865_v6 = vrot.slane %v864_v24, 4 }
 0x1de   : > { %v976_v34 = vadd.f32 %v975_v35, %v974_v50  ;;  %v1003_v58 = vmax.f32 %v996_v45, %v998_v38  ;;  %v753_v8 = vadd.f32 %v752_v46, %v751_v16  ;;  %vm789_vm5 = vcmask 516096   ;;  %v1012_v16 = vld [vmem:[#allocation2 + $0x2] sm:$0x1]  ;;  %v1015_v38 = vld [vmem:[#allocation3 + $0x2] sm:$0x1] }
 0x1df   : > { %v782_v33 = vmax.f32 %v780_v39, %v781_v29  ;;  %v894_v56 = vrot.slane %v893_v2, 4  ;;  %v1086_v40 = vadd.f32 %v2140_v26, %v1084_v54  ;;  %v866_v20 = vadd.f32 %v865_v6, %v864_v24  ;;  %v1124_v54 = vld [vmem:[#allocation2 + $0x3] sm:$0x1] }
 0x1e0   : > { %v977_v61 = vrot.slane %v976_v34, 4  ;;  %v1005_v15 = vmax.f32 %v1003_v58, %v1004_v43  ;;  %v1109_v31 = vsel %vm587_vm2, %v1100_v17, -inf  ;;  %v754_v30 = vrot.slane %v753_v8, 2 }
 0x1e1   : > { %v783_v35 = vrot.slane %v782_v33, 2  ;;  %v895_v9 = vmax.f32 %v893_v2, %v894_v56  ;;  %v1088_v27 = vadd.f32 %v1087_v44, %v1086_v40  ;;  %v867_v52 = vrot.slane %v866_v20, 2 }
 0x1e2   : > { %v978_v49 = vadd.f32 %v977_v61, %v976_v34  ;;  %v1006_v45 = vrot.slane %v1005_v15, 4  ;;  %v1110_v60 = vmax.f32 %v2101_v51, %v1109_v31  ;;  %v755_v48 = vadd.f32 %v754_v30, %v753_v8 }
 0x1e3   : > { %v784_v13 = vmax.f32 %v782_v33, %v783_v35  ;;  %v896_v10 = vrot.slane %v895_v9, 2  ;;  %v1089_v14 = vrot.slane %v1088_v27, 4  ;;  %v868_v26 = vadd.f32 %v867_v52, %v866_v20  ;;  %v1127_v33 = vld [vmem:[#allocation3 + $0x3] sm:$0x1] }
 0x1e4   : > { %v979_v12 = vrot.slane %v978_v49, 2  ;;  %v1007_v11 = vmax.f32 %v1005_v15, %v1006_v45  ;;  %v1115_v43 = vmax.f32 %v1108_v23, %v1110_v60  ;;  %v756_v1 = vrot.slane %v755_v48, 1 }
 0x1e5   : > { %v785_v53 = vrot.slane %v784_v13, 1  ;;  %v897_v18 = vmax.f32 %v895_v9, %v896_v10  ;;  %v1090_v44 = vadd.f32 %v1089_v14, %v1088_v27  ;;  %v869_v41 = vrot.slane %v868_v26, 1 }
 0x1e6   : > { %v980_v47 = vadd.f32 %v979_v12, %v978_v49  ;;  %v1008_v51 = vrot.slane %v1007_v11, 2  ;;  %v1117_v55 = vmax.f32 %v1115_v43, %v1116_v32  ;;  %v757_v0 = vadd.f32 %v756_v1, %v755_v48 }
 0x1e7   : > { %v786_v57 = vmax.f32 %v784_v13, %v785_v53  ;;  %v898_v36 = vrot.slane %v897_v18, 1  ;;  %v1091_v22 = vrot.slane %v1090_v44, 2  ;;  %v870_v25 = vadd.f32 %v869_v41, %v868_v26 }
 0x1e8   : > { %v981_v4 = vrot.slane %v980_v47, 1  ;;  %v1009_v62 = vmax.f32 %v1007_v11, %v1008_v51  ;;  %v1118_v5 = vrot.slane %v1117_v55, 4  ;;  %v788_v23 = vadd.f32 %v787_v37, %v757_v0 }
 0x1e9   : > { %v792_v59 = vmax.f32 %v791_v21, %v786_v57  ;;  %v899_v7 = vmax.f32 %v897_v18, %v898_v36  ;;  %v1092_v39 = vadd.f32 %v1091_v22, %v1090_v44  ;;  %v901_v3 = vadd.f32 %v900_v19, %v870_v25 }
 0x1ea   : > { %v982_v42 = vadd.f32 %v981_v4, %v980_v47  ;;  %v1010_v24 = vrot.slane %v1009_v62, 1  ;;  %v1119_v50 = vmax.f32 %v1117_v55, %v1118_v5  ;;  %790 = vst.msk [vmem:[#allocation2] sm:$0x1] %vm789_vm5, %v788_v23 }
 0x1eb   : > { %793 = vst.msk [vmem:[#allocation3] sm:$0x1] %vm789_vm5, %v792_v59  ;;  %v904_v32 = vmax.f32 %v903_v28, %v899_v7  ;;  %v1093_v63 = vrot.slane %v1092_v39, 1  ;;  %902 = vst.msk [vmem:[#allocation2 + $0x1] sm:$0x1] %vm789_vm5, %v901_v3 }
 0x1ec   : > { %v1011_v46 = vmax.f32 %v1009_v62, %v1010_v24  ;;  %v1013_v29 = vadd.f32 %v1012_v16, %v982_v42  ;;  %v1120_v2 = vrot.slane %v1119_v50, 2 }
 0x1ed   : > { %905 = vst.msk [vmem:[#allocation3 + $0x1] sm:$0x1] %vm789_vm5, %v904_v32  ;;  %v1094_v6 = vadd.f32 %v1093_v63, %v1092_v39 }
 0x1ee   : > { %1014 = vst.msk [vmem:[#allocation2 + $0x2] sm:$0x1] %vm789_vm5, %v1013_v29  ;;  %v1016_v34 = vmax.f32 %v1015_v38, %v1011_v46  ;;  %v1121_v58 = vmax.f32 %v1119_v50, %v1120_v2 }
 0x1ef   : > { %v1125_v17 = vadd.f32 %v1124_v54, %v1094_v6 }
 0x1f0   : > { %1017 = vst.msk [vmem:[#allocation3 + $0x2] sm:$0x1] %vm789_vm5, %v1016_v34  ;;  %v1122_v8 = vrot.slane %v1121_v58, 1 }
 0x1f1   : > { %1126 = vst.msk [vmem:[#allocation2 + $0x3] sm:$0x1] %vm789_vm5, %v1125_v17 }
 0x1f2   : > { %v1123_v56 = vmax.f32 %v1121_v58, %v1122_v8  ;;  %1133 = sbr.rel (%p1495_p5) target bundleno = 1346 (0x542), region = 76 }
 0x1f4   : > { %v1128_v40 = vmax.f32 %v1127_v33, %v1123_v56 }
 0x1f6   : > { %1129 = vst.msk [vmem:[#allocation3 + $0x3] sm:$0x1] %vm789_vm5, %v1128_v40 }
 0x1f7   : > { %v1135_v20 = vld [vmem:[%s2348_s2] sm:$0xf]  ;;  %v1681_v61 = vmov 0   ;;  %v1682_v15 = vmov 0.0   ;;  %v1650_v31 = vld [vmem:[%s2354_s8 + $0x18] sm:$0xff]   ;;  %vm1683_vm6 = vmmov 0  }
 0x1f8   : > { %1649 = vset.pattern.permute.xlu0 %v1681_v61  ;;  %1576 = vmatprep.subr.bf16.mxu1 %v1682_v15  ;;  %v1651_v30 = vld [vmem:[%s2354_s8 + $0x10] sm:$0xff]   ;;  %v1652_v35 = vld [vmem:[%s2354_s8 + $0x8] sm:$0xff]   ;;  %v1653_v9 = vld [vmem:[%s2354_s8] sm:$0xff]  }
 0x1f9   : > { %1138 = vperm.xlu0 %1649, %v1135_v20   ;;  %1584 = vmatprep.mubr.msk.bf16.mxu1 %vm1683_vm6, %v1682_v15  ;;  %v1658_v52 = vld [vmem:[%s2356_s10 + $0x38] sm:$0xff]   ;;  %v1655_v60 = vld [vmem:[%s2353_s7 + $0x10] sm:$0xff]   ;;  %v1656_v48 = vld [vmem:[%s2353_s7 + $0x8] sm:$0xff]  }
 0x1fa   : > { %1577 = vmatpush3.bf16.msra.mxu1 %v1650_v31  ;;  %1600 = vmatprep.subr.bf16.mxu0 %v1682_v15  ;;  %v1654_v45 = vld [vmem:[%s2353_s7 + $0x18] sm:$0xff]   ;;  %v1657_v13 = vld [vmem:[%s2353_s7] sm:$0xff]   ;;  %v1659_v10 = vld [vmem:[%s2356_s10 + $0x30] sm:$0xff]  }
 0x1fb   : > { %1578 = vmatprep.subr.bf16.mxu1 %v1682_v15  ;;  %1616 = vmatprep.mubr.msk.bf16.mxu0 %vm1683_vm6, %v1682_v15  ;;  %v1660_v14 = vld [vmem:[%s2356_s10 + $0x28] sm:$0xff]   ;;  %v1661_v26 = vld [vmem:[%s2356_s10 + $0x20] sm:$0xff]   ;;  %v1662_v12 = vld [vmem:[%s2356_s10 + $0x18] sm:$0xff]  }
 0x1fc   : > { %1601 = vmatpush3.bf16.msra.mxu0 %v1658_v52  ;;  %v1663_v11 = vld [vmem:[%s2356_s10 + $0x10] sm:$0xff]   ;;  %v1134_v43 = vld [vmem:[#allocation2] sm:$0xf]  ;;  %v1664_v44 = vld [vmem:[%s2356_s10 + $0x8] sm:$0xff]  }
 0x1fd   : > { %v1142_v27 = vld [vmem:[#allocation3] sm:$0xf]  ;;  %1602 = vmatprep.subr.bf16.mxu0 %v1682_v15  ;;  %v1506_v0 = vld [vmem:[%s2355_s9] ss:$0 sm:$0xff] }
 0x1fe   : > { %1579 = vmatpush3.bf16.msra.mxu1 %v1651_v30  ;;  %v1152_v49 = vpack.c.bf16 %v1142_v27, %v1142_v27  ;;  %v1665_v37 = vld [vmem:[%s2356_s10] sm:$0xff]  }
 0x1ff   : > { %1580 = vmatprep.subr.bf16.mxu1 %v1682_v15  ;;  %v1507_v62 = vld [vmem:[%s2357_s11] ss:$0 sm:$0xff] }
 0x200   : > { %1603 = vmatpush3.bf16.msra.mxu0 %v1659_v10 }
 0x201   : > { %1604 = vmatprep.subr.bf16.mxu0 %v1682_v15 }
 0x202   : > { %1581 = vmatpush3.bf16.msra.mxu1 %v1652_v35 }
 0x203   : > { %1582 = vmatprep.subr.bf16.mxu1 %v1682_v15 }
 0x204   : > { %1605 = vmatpush3.bf16.msra.mxu0 %v1660_v14 }
 0x205   : > { %1606 = vmatprep.subr.bf16.mxu0 %v1682_v15 }
 0x206   : > { %1583 = vmatpush3.bf16.msra.mxu1 %v1653_v9 }
 0x207   : > { %1588 = vmatprep.subr.bf16.mxu1 %v1682_v15 }
 0x208   : > { %1607 = vmatpush3.bf16.msra.mxu0 %v1661_v26 }
 0x209   : > { %1585 = vmatmul.mubr.msk.bf16.vlgmr.msra.gmra.mxu1 %vm587_vm2, %v1152_v49  ;;  %1608 = vmatprep.subr.bf16.mxu0 %v1682_v15 }
 0x20a   : > { %1589 = vmatpush3.bf16.msra.mxu1 %v1654_v45  ;;  %1596 = vmatprep.mubr.msk.bf16.mxu1 %vm1683_vm6, %v1682_v15 }
 0x20b   : > { %1590 = vmatprep.subr.bf16.mxu1 %v1682_v15 }
 0x20c   : > { %1609 = vmatpush3.bf16.msra.mxu0 %v1662_v12 }
 0x20d   : > { %1610 = vmatprep.subr.bf16.mxu0 %v1682_v15 }
 0x20e   : > { %1591 = vmatpush3.bf16.msra.mxu1 %v1655_v60 }
 0x20f   : > { %1592 = vmatprep.subr.bf16.mxu1 %v1682_v15 }
 0x210   : > { %1611 = vmatpush3.bf16.msra.mxu0 %v1663_v11 }
 0x211   : > { %1612 = vmatprep.subr.bf16.mxu0 %v1682_v15 }
 0x212   : > { %1593 = vmatpush3.bf16.msra.mxu1 %v1656_v48 }
 0x213   : > { %1594 = vmatprep.subr.bf16.mxu1 %v1682_v15 }
 0x214   : > { %1613 = vmatpush3.bf16.msra.mxu0 %v1664_v44 }
 0x215   : > { %1614 = vmatprep.subr.bf16.mxu0 %v1682_v15 }
 0x216   : > { %1595 = vmatpush3.bf16.msra.mxu1 %v1657_v13 }
 0x218   : > { %1615 = vmatpush3.bf16.msra.mxu0 %v1665_v37 }
 0x274   : > { %v1139_v1 = vpop.permute.xlu0 %1138 }
 0x275   : > { %v1141_v53 = vmul.f32 %v1139_v1, %v1134_v43 }
 0x277   : > { %v1143_v18 = vpack.c.bf16 %v1141_v53, %v1141_v53 }
 0x279   : > { %1597 = vmatmul.mubr.msk.bf16.vlgmr.msra.gmra.mxu1 %vm587_vm2, %v1143_v18  ;;  %vm1416_vm2 = vcmask 11264  }
 0x2c9   : > { %v1222_v21 = vpop.f32.mrf.mxu1 }
 0x2cb   : > { %v1586_v41 = vpop.f32.mrf.mxu1 }
 0x2cd   : > { %v1225_v47 = vpop.f32.mrf.mxu1 }
 0x2cf   : > { %v1587_v51 = vpop.f32.mrf.mxu1 }
 0x339   : > { %v1289_v55 = vpop.f32.mrf.mxu1 }
 0x33a   : > { %v1290_v57 = vadd.f32 %v1289_v55, %v1222_v21 }
 0x33b   : > { %v1598_v36 = vpop.f32.mrf.mxu1 }
 0x33c   : > { %v1302_v19 = vadd.f32 %v1506_v0, %v1290_v57 }
 0x33d   : > { %v1292_v22 = vpop.f32.mrf.mxu1 }
 0x33e   : > { %v1303_v25 = vmax.f32 %v1302_v19, 0.0 }
 0x33f   : > { %v1599_v28 = vpop.f32.mrf.mxu1 }
 0x340   : > { %v1304_v4 = vpack.c.bf16 %v1303_v25, %v1303_v25 }
 0x342   : > { %1617 = vmatmul.mubr.bf16.vlgmr.msra.gmra.mxu0 %v1304_v4 }
 0x402   : > { %v1410_v5 = vpop.f32.mrf.mxu0 }
 0x403   : > { %v1411_v23 = vadd.f32 %v1507_v62, %v1410_v5 }
 0x404   : > { %v1618_v59 = vpop.f32.mrf.mxu0 }
 0x405   : > { %v1417_v7 = vsel %vm1416_vm2, %v1411_v23, -inf }
 0x406   : > { %1418 = vmax.xlane.f32.xlu0 %v1417_v7  ;;  %v1413_v16 = vpop.f32.mrf.mxu0 }
 0x408   : > { %v1619_v39 = vpop.f32.mrf.mxu0 }
 0x48f   : > { %v1419_v3 = vpop.xlane.xlu0 %1418 }
 0x490   : > { %v1420_v42 = vsub.f32 %v1411_v23, %v1419_v3 }
 0x492   : > { %v1421_v24 = vmul.f32 1.442695, %v1420_v42 }
 0x494   : > { %1666 = vpow2.f32 %v1421_v24 }
 0x4a1   : > { %v1667_v50 = vpop.eup %1666 }
 0x4a2   : > { %v1423_v32 = vsel %vm1416_vm2, %v1667_v50, 0.0 }
 0x4a3   : > { %1424 = vadd.xlane.f32.xlu1 %v1423_v32 }
 0x52c   : > { %v1425_v38 = vpop.xlane.xlu1 %1424 }
 0x52d   : > { %1668 = vlog2.f32 %v1425_v38 }
 0x53a   : > { %v1669_v63 = vpop.eup %1668 }
 0x53b   : > { %v1427_v46 = vmul.f32 0.6931472, %v1669_v63 }
 0x53d   : > { %v1428_v29 = vadd.f32 %v1427_v46, %v1419_v3 }
 0x53f   : > { %v1429_v2 = vsub.f32 %v1411_v23, %v1428_v29 }
 0x541   : > { %1430 = vst.msk [vmem:[%s2358_s12] sm:$0xf] %vm1416_vm2, %v1429_v2 }
 0x542 PF: > { %s22_s21 = sadd.s32 1, %s1676_s21  }
 0x543   : > { %p19_p6 = scmp.ge.s32.totalorder %s22_s21, 4  }
 0x545   :  { %21 = sbr.rel (!%p19_p6) target bundleno = 1 (0x1), region = 105 }

</bundles_post_ra>
